<compile_context>
chip_gen: v7x
topology: tpu7x:2x2x1
jax: 0.10.0
libtpu: 0.0.40
codegen_flags: <defaults>
</compile_context>

<pallas_src>
import jax
import jax.numpy as jnp
from jax import lax
from jax.experimental import pallas as pl
from jax.experimental.pallas import tpu as pltpu

BN_EPS = 1e-5   # PyTorch BatchNorm1d default
LANE = 128      # pad the tiny action dim to one lane-width for dense stores
HIDDEN = 512

# Row indices inside the packed (8, HIDDEN) per-feature parameter tile.
ROW_G1, ROW_BE1, ROW_G2, ROW_BE2, ROW_B3 = 0, 1, 2, 3, 4


def _bn_relu(h, gamma, beta):
    """Training-mode BatchNorm1d (biased batch var) + ReLU, affine folded.

    One mul + one add (+ max) on the (B, 512) tile; the (1, 512) scale/shift
    rows are computed once.  One-pass variance E[h^2] - mean^2, clamped to
    >= 0 so f32 cancellation can never push rsqrt into NaN.
    """
    mean = jnp.mean(h, axis=0, keepdims=True)
    var = jnp.maximum(jnp.mean(h * h, axis=0, keepdims=True) - mean * mean, 0.0)
    scale = gamma * lax.rsqrt(var + BN_EPS)
    shift = beta - mean * scale
    return jnp.maximum(h * scale + shift, 0.0)


def qnetwork_kernel(x_ref, w1_ref, rows_ref, w2_hbm, w3_hbm, o_ref,
                    w2_vmem, w3_vmem, sem):
    # Kick off the two big weight DMAs immediately so they overlap with the
    # fc1/BN1 (hides w2, 512 KiB) and fc2/BN2 (hides w3, 128 KiB) compute.
    cp_w2 = pltpu.make_async_copy(w2_hbm, w2_vmem, sem.at[0])
    cp_w3 = pltpu.make_async_copy(w3_hbm, w3_vmem, sem.at[1])
    cp_w2.start()
    cp_w3.start()

    # fc1 -> bn1 -> relu  (fc1 bias omitted: cancelled exactly by the BN
    # batch-mean subtraction in training mode)
    x = x_ref[...].astype(jnp.bfloat16)
    h = jnp.dot(x, w1_ref[...], preferred_element_type=jnp.float32)
    h = _bn_relu(h,
                 rows_ref[ROW_G1:ROW_G1 + 1, :],
                 rows_ref[ROW_BE1:ROW_BE1 + 1, :])

    # fc2 -> bn2 -> relu  (fc2 bias omitted for the same reason)
    cp_w2.wait()
    h = jnp.dot(h.astype(jnp.bfloat16), w2_vmem[...],
                preferred_element_type=jnp.float32)
    h = _bn_relu(h,
                 rows_ref[ROW_G2:ROW_G2 + 1, :],
                 rows_ref[ROW_BE2:ROW_BE2 + 1, :])

    # fc3 (output padded to a dense 128-lane block; extra columns are zero)
    cp_w3.wait()
    o_ref[...] = (jnp.dot(h.astype(jnp.bfloat16), w3_vmem[...],
                          preferred_element_type=jnp.float32)
                  + rows_ref[ROW_B3:ROW_B3 + 1, :LANE]).astype(o_ref.dtype)


def qnetwork_forward(x, params, action_size):
    """x: (B, state_size) float32, B a multiple of 8. Returns (B, action_size)."""
    B = x.shape[0]
    hidden = params["w2"].shape[0]

    def full_spec(a):
        # single grid point; operand is one full-array VMEM block
        return pl.BlockSpec(a.shape, lambda: (0,) * a.ndim)

    out = pl.pallas_call(
        qnetwork_kernel,
        out_shape=jax.ShapeDtypeStruct((B, LANE), jnp.float32),
        grid=(),
        in_specs=[
            full_spec(x),                         # x            -> VMEM block
            full_spec(params["w1"]),              # w1 (8 KiB)   -> VMEM block
            full_spec(params["rows"]),            # packed rows  -> VMEM block
            pl.BlockSpec(memory_space=pl.ANY),    # w2: manual overlapped DMA
            pl.BlockSpec(memory_space=pl.ANY),    # w3: manual overlapped DMA
        ],
        out_specs=pl.BlockSpec((B, LANE), lambda: (0, 0)),
        scratch_shapes=[
            pltpu.VMEM((hidden, hidden), jnp.bfloat16),   # w2 landing buffer
            pltpu.VMEM((hidden, LANE), jnp.bfloat16),     # w3 landing buffer
            pltpu.SemaphoreType.DMA((2,)),
        ],
        # Actual footprint is ~0.8 MiB weights + small activations; 8 MiB
        # leaves headroom and never over-reserves v7x's 64 MiB physical VMEM.
        compiler_params=pltpu.CompilerParams(vmem_limit_bytes=8 << 20),
    )(x, params["w1"], params["rows"], params["w2"], params["w3"])
    return out[:, :action_size]


def init_params(key, state_size, action_size, hidden=HIDDEN):
    """Deterministic synthetic parameters (PyTorch-like init scales).

    Matmul weights are stored (in_features, out_features) in bf16 (MXU-native,
    halves weight DMA bytes); fc3 weight is pre-padded to 128 output columns.
    The five per-feature rows (g1, be1, g2, be2, padded b3) are packed into a
    single (8, hidden) f32 tile read inside the kernel with static slices.
    fc1/fc2 biases exist only for the pure-JAX reference (the kernel never
    loads them — training-mode BN cancels them exactly).
    """
    ks = jax.random.split(key, 8)

    def lin(kw, kb, fan_in, fan_out):
        bound = 1.0 / jnp.sqrt(fan_in)
        w = jax.random.uniform(kw, (fan_in, fan_out), jnp.float32, -bound, bound)
        b = jax.random.uniform(kb, (1, fan_out), jnp.float32, -bound, bound)
        return w, b

    w1, b1 = lin(ks[0], ks[1], state_size, hidden)
    w2, b2 = lin(ks[2], ks[3], hidden, hidden)
    w3, b3 = lin(ks[4], ks[5], hidden, action_size)

    w3p = jnp.zeros((hidden, LANE), jnp.float32).at[:, :action_size].set(w3)
    b3p = jnp.zeros((1, LANE), jnp.float32).at[:, :action_size].set(b3)

    # BatchNorm affine params (PyTorch init: gamma=1, beta=0; perturb bn1 so
    # the affine path is actually exercised). Kept in f32.
    g1 = 1.0 + 0.1 * jax.random.normal(ks[6], (1, hidden), jnp.float32)
    be1 = 0.1 * jax.random.normal(ks[7], (1, hidden), jnp.float32)
    g2 = jnp.ones((1, hidden), jnp.float32)
    be2 = jnp.zeros((1, hidden), jnp.float32)

    # Pack the five small per-feature rows into one aligned (8, hidden) tile.
    rows = jnp.zeros((8, hidden), jnp.float32)
    rows = rows.at[ROW_G1].set(g1[0])
    rows = rows.at[ROW_BE1].set(be1[0])
    rows = rows.at[ROW_G2].set(g2[0])
    rows = rows.at[ROW_BE2].set(be2[0])
    rows = rows.at[ROW_B3, :LANE].set(b3p[0])

    return dict(w1=w1.astype(jnp.bfloat16), b1=b1,
                w2=w2.astype(jnp.bfloat16), b2=b2,
                w3=w3p.astype(jnp.bfloat16), b3p=b3p,
                g1=g1, be1=be1, g2=g2, be2=be2,
                rows=rows)


def qnetwork_reference(x, p, action_size):
    """Pure-JAX reference: fc(+bias) -> BN(train, two-pass var) -> ReLU, using
    the same bf16 weights / f32 accumulation as the kernel. Keeps the fc1/fc2
    biases to demonstrate that dropping them in the kernel is equivalent."""
    def dot(a, w):
        return jnp.dot(a.astype(jnp.bfloat16), w,
                       preferred_element_type=jnp.float32)

    def bn_relu(h, g, b):
        m = jnp.mean(h, axis=0, keepdims=True)
        v = jnp.mean((h - m) ** 2, axis=0, keepdims=True)
        return jnp.maximum((h - m) / jnp.sqrt(v + BN_EPS) * g + b, 0.0)

    h = bn_relu(dot(x, p["w1"]) + p["b1"], p["g1"], p["be1"])
    h = bn_relu(dot(h, p["w2"]) + p["b2"], p["g2"], p["be2"])
    out = dot(h, p["w3"]) + p["b3p"]
    return out[:, :action_size]


if __name__ == "__main__":
    # LunarLander-v2: state_size=8, action_size=4. Small batch (multiple of 8)
    # so BN batch statistics are meaningful and MXU rows are better filled.
    B, STATE, ACTION = 32, 8, 4
    key = jax.random.PRNGKey(0)
    kx, kp = jax.random.split(key)

    x = jax.random.normal(kx, (B, STATE), jnp.float32)
    params = init_params(kp, STATE, ACTION)

    out = qnetwork_forward(x, params, ACTION)
    out = jax.block_until_ready(out)

    ref = qnetwork_reference(x, params, ACTION)
    assert out.shape == (B, ACTION)
    # bf16 matmul path in both kernel and reference; loose tolerance covers
    # accumulation-order, one-pass-vs-two-pass variance and bias-cancellation
    # rounding differences.
    assert jnp.allclose(out, ref, atol=1e-2, rtol=1e-2), "mismatch vs reference"
    print("KERNEL_OK")
</pallas_src>

<mosaic_0001>
module attributes {stable_mosaic.version = 11 : i64} {
  func.func @qnetwork_kernel(%arg0: memref<32x8xf32, #tpu.memory_space<vmem>>, %arg1: memref<8x512xbf16, #tpu.memory_space<vmem>>, %arg2: memref<8x512xf32, #tpu.memory_space<vmem>>, %arg3: memref<512x512xbf16, #tpu.memory_space<any>>, %arg4: memref<512x128xbf16, #tpu.memory_space<any>>, %arg5: memref<32x128xf32, #tpu.memory_space<vmem>>, %arg6: memref<512x512xbf16, #tpu.memory_space<vmem>>, %arg7: memref<512x128xbf16, #tpu.memory_space<vmem>>, %arg8: memref<2x!tpu.dma_semaphore, #tpu.memory_space<semaphore_mem>>) attributes {dimension_semantics = [], scalar_prefetch = 0 : i64, scratch_operands = 3 : i64, tpu.core_type = #tpu.core_type<tc>} {
    %c0_i32 = arith.constant 0 : i32
    %0 = tpu.memref_slice %arg8[%c0_i32] : memref<2x!tpu.dma_semaphore, #tpu.memory_space<semaphore_mem>> -> memref<1x!tpu.dma_semaphore, #tpu.memory_space<semaphore_mem>>
    %1 = tpu.memref_squeeze %0 : memref<1x!tpu.dma_semaphore, #tpu.memory_space<semaphore_mem>> -> memref<!tpu.dma_semaphore, #tpu.memory_space<semaphore_mem>>
    tpu.enqueue_dma source(%arg3 : memref<512x512xbf16, #tpu.memory_space<any>>) target(%arg6 : memref<512x512xbf16, #tpu.memory_space<vmem>>) target_semaphore(%1 : memref<!tpu.dma_semaphore, #tpu.memory_space<semaphore_mem>>)
    %c1_i32 = arith.constant 1 : i32
    %2 = tpu.memref_slice %arg8[%c1_i32] : memref<2x!tpu.dma_semaphore, #tpu.memory_space<semaphore_mem>> -> memref<1x!tpu.dma_semaphore, #tpu.memory_space<semaphore_mem>>
    %3 = tpu.memref_squeeze %2 : memref<1x!tpu.dma_semaphore, #tpu.memory_space<semaphore_mem>> -> memref<!tpu.dma_semaphore, #tpu.memory_space<semaphore_mem>>
    tpu.enqueue_dma source(%arg4 : memref<512x128xbf16, #tpu.memory_space<any>>) target(%arg7 : memref<512x128xbf16, #tpu.memory_space<vmem>>) target_semaphore(%3 : memref<!tpu.dma_semaphore, #tpu.memory_space<semaphore_mem>>)
    %c0 = arith.constant 0 : index
    %c0_0 = arith.constant 0 : index
    %4 = vector.load %arg0[%c0, %c0_0] : memref<32x8xf32, #tpu.memory_space<vmem>>, vector<32x8xf32>
    %5 = arith.truncf %4 : vector<32x8xf32> to vector<32x8xbf16>
    %c0_1 = arith.constant 0 : index
    %c0_2 = arith.constant 0 : index
    %6 = vector.load %arg1[%c0_1, %c0_2] : memref<8x512xbf16, #tpu.memory_space<vmem>>, vector<8x512xbf16>
    %cst = arith.constant dense<0.000000e+00> : vector<32x512xf32>
    %7 = tpu.matmul %5, %6, %cst {dimension_numbers = #tpu.dot_dimension_numbers<[1], [0], [0], [1], [0, 0, 1, 1], [], []>} : vector<32x8xbf16>, vector<8x512xbf16>, vector<32x512xf32> -> vector<32x512xf32>
    %c0_3 = arith.constant 0 : index
    %c0_4 = arith.constant 0 : index
    %8 = vector.load %arg2[%c0_3, %c0_4] : memref<8x512xf32, #tpu.memory_space<vmem>>, vector<1x512xf32>
    %c1 = arith.constant 1 : index
    %c0_5 = arith.constant 0 : index
    %9 = vector.load %arg2[%c1, %c0_5] : memref<8x512xf32, #tpu.memory_space<vmem>>, vector<1x512xf32>
    %cst_6 = arith.constant dense<0.000000e+00> : vector<512xf32>
    %10 = vector.multi_reduction <add>, %7, %cst_6 [0] : vector<32x512xf32> to vector<512xf32>
    %11 = vector.shape_cast %10 : vector<512xf32> to vector<1x512xf32>
    %cst_7 = arith.constant 3.200000e+01 : f32
    %12 = vector.broadcast %cst_7 : f32 to vector<1x512xf32>
    %13 = arith.divf %11, %12 : vector<1x512xf32>
    %14 = arith.mulf %7, %7 : vector<32x512xf32>
    %cst_8 = arith.constant dense<0.000000e+00> : vector<512xf32>
    %15 = vector.multi_reduction <add>, %14, %cst_8 [0] : vector<32x512xf32> to vector<512xf32>
    %16 = vector.shape_cast %15 : vector<512xf32> to vector<1x512xf32>
    %cst_9 = arith.constant 3.200000e+01 : f32
    %17 = vector.broadcast %cst_9 : f32 to vector<1x512xf32>
    %18 = arith.divf %16, %17 : vector<1x512xf32>
    %19 = arith.mulf %13, %13 : vector<1x512xf32>
    %20 = arith.subf %18, %19 : vector<1x512xf32>
    %cst_10 = arith.constant 0.000000e+00 : f32
    %21 = vector.broadcast %cst_10 : f32 to vector<1x512xf32>
    %22 = arith.maximumf %20, %21 : vector<1x512xf32>
    %cst_11 = arith.constant 9.99999974E-6 : f32
    %23 = vector.broadcast %cst_11 : f32 to vector<1x512xf32>
    %24 = arith.addf %22, %23 : vector<1x512xf32>
    %25 = math.rsqrt %24 : vector<1x512xf32>
    %26 = arith.mulf %8, %25 : vector<1x512xf32>
    %27 = arith.mulf %13, %26 : vector<1x512xf32>
    %28 = arith.subf %9, %27 : vector<1x512xf32>
    %29 = vector.broadcast %26 : vector<1x512xf32> to vector<32x512xf32>
    %30 = arith.mulf %7, %29 : vector<32x512xf32>
    %31 = vector.broadcast %28 : vector<1x512xf32> to vector<32x512xf32>
    %32 = arith.addf %30, %31 : vector<32x512xf32>
    %cst_12 = arith.constant 0.000000e+00 : f32
    %33 = vector.broadcast %cst_12 : f32 to vector<32x512xf32>
    %34 = arith.maximumf %32, %33 : vector<32x512xf32>
    %c0_i32_13 = arith.constant 0 : i32
    %35 = tpu.memref_slice %arg8[%c0_i32_13] : memref<2x!tpu.dma_semaphore, #tpu.memory_space<semaphore_mem>> -> memref<1x!tpu.dma_semaphore, #tpu.memory_space<semaphore_mem>>
    %36 = tpu.memref_squeeze %35 : memref<1x!tpu.dma_semaphore, #tpu.memory_space<semaphore_mem>> -> memref<!tpu.dma_semaphore, #tpu.memory_space<semaphore_mem>>
    tpu.wait_dma2 semaphore(%36 : memref<!tpu.dma_semaphore, #tpu.memory_space<semaphore_mem>>) src(%arg3 : memref<512x512xbf16, #tpu.memory_space<any>>) dst(%arg6 : memref<512x512xbf16, #tpu.memory_space<vmem>>)
    %37 = arith.truncf %34 : vector<32x512xf32> to vector<32x512xbf16>
    %c0_14 = arith.constant 0 : index
    %c0_15 = arith.constant 0 : index
    %38 = vector.load %arg6[%c0_14, %c0_15] : memref<512x512xbf16, #tpu.memory_space<vmem>>, vector<512x512xbf16>
    %cst_16 = arith.constant dense<0.000000e+00> : vector<32x512xf32>
    %39 = tpu.matmul %37, %38, %cst_16 {dimension_numbers = #tpu.dot_dimension_numbers<[1], [0], [0], [1], [0, 0, 1, 1], [], []>} : vector<32x512xbf16>, vector<512x512xbf16>, vector<32x512xf32> -> vector<32x512xf32>
    %c2 = arith.constant 2 : index
    %c0_17 = arith.constant 0 : index
    %40 = vector.load %arg2[%c2, %c0_17] : memref<8x512xf32, #tpu.memory_space<vmem>>, vector<1x512xf32>
    %c3 = arith.constant 3 : index
    %c0_18 = arith.constant 0 : index
    %41 = vector.load %arg2[%c3, %c0_18] : memref<8x512xf32, #tpu.memory_space<vmem>>, vector<1x512xf32>
    %cst_19 = arith.constant dense<0.000000e+00> : vector<512xf32>
    %42 = vector.multi_reduction <add>, %39, %cst_19 [0] : vector<32x512xf32> to vector<512xf32>
    %43 = vector.shape_cast %42 : vector<512xf32> to vector<1x512xf32>
    %cst_20 = arith.constant 3.200000e+01 : f32
    %44 = vector.broadcast %cst_20 : f32 to vector<1x512xf32>
    %45 = arith.divf %43, %44 : vector<1x512xf32>
    %46 = arith.mulf %39, %39 : vector<32x512xf32>
    %cst_21 = arith.constant dense<0.000000e+00> : vector<512xf32>
    %47 = vector.multi_reduction <add>, %46, %cst_21 [0] : vector<32x512xf32> to vector<512xf32>
    %48 = vector.shape_cast %47 : vector<512xf32> to vector<1x512xf32>
    %cst_22 = arith.constant 3.200000e+01 : f32
    %49 = vector.broadcast %cst_22 : f32 to vector<1x512xf32>
    %50 = arith.divf %48, %49 : vector<1x512xf32>
    %51 = arith.mulf %45, %45 : vector<1x512xf32>
    %52 = arith.subf %50, %51 : vector<1x512xf32>
    %cst_23 = arith.constant 0.000000e+00 : f32
    %53 = vector.broadcast %cst_23 : f32 to vector<1x512xf32>
    %54 = arith.maximumf %52, %53 : vector<1x512xf32>
    %cst_24 = arith.constant 9.99999974E-6 : f32
    %55 = vector.broadcast %cst_24 : f32 to vector<1x512xf32>
    %56 = arith.addf %54, %55 : vector<1x512xf32>
    %57 = math.rsqrt %56 : vector<1x512xf32>
    %58 = arith.mulf %40, %57 : vector<1x512xf32>
    %59 = arith.mulf %45, %58 : vector<1x512xf32>
    %60 = arith.subf %41, %59 : vector<1x512xf32>
    %61 = vector.broadcast %58 : vector<1x512xf32> to vector<32x512xf32>
    %62 = arith.mulf %39, %61 : vector<32x512xf32>
    %63 = vector.broadcast %60 : vector<1x512xf32> to vector<32x512xf32>
    %64 = arith.addf %62, %63 : vector<32x512xf32>
    %cst_25 = arith.constant 0.000000e+00 : f32
    %65 = vector.broadcast %cst_25 : f32 to vector<32x512xf32>
    %66 = arith.maximumf %64, %65 : vector<32x512xf32>
    %c1_i32_26 = arith.constant 1 : i32
    %67 = tpu.memref_slice %arg8[%c1_i32_26] : memref<2x!tpu.dma_semaphore, #tpu.memory_space<semaphore_mem>> -> memref<1x!tpu.dma_semaphore, #tpu.memory_space<semaphore_mem>>
    %68 = tpu.memref_squeeze %67 : memref<1x!tpu.dma_semaphore, #tpu.memory_space<semaphore_mem>> -> memref<!tpu.dma_semaphore, #tpu.memory_space<semaphore_mem>>
    tpu.wait_dma2 semaphore(%68 : memref<!tpu.dma_semaphore, #tpu.memory_space<semaphore_mem>>) src(%arg4 : memref<512x128xbf16, #tpu.memory_space<any>>) dst(%arg7 : memref<512x128xbf16, #tpu.memory_space<vmem>>)
    %69 = arith.truncf %66 : vector<32x512xf32> to vector<32x512xbf16>
    %c0_27 = arith.constant 0 : index
    %c0_28 = arith.constant 0 : index
    %70 = vector.load %arg7[%c0_27, %c0_28] : memref<512x128xbf16, #tpu.memory_space<vmem>>, vector<512x128xbf16>
    %cst_29 = arith.constant dense<0.000000e+00> : vector<32x128xf32>
    %71 = tpu.matmul %69, %70, %cst_29 {dimension_numbers = #tpu.dot_dimension_numbers<[1], [0], [0], [1], [0, 0, 1, 1], [], []>} : vector<32x512xbf16>, vector<512x128xbf16>, vector<32x128xf32> -> vector<32x128xf32>
    %c4 = arith.constant 4 : index
    %c0_30 = arith.constant 0 : index
    %72 = vector.load %arg2[%c4, %c0_30] : memref<8x512xf32, #tpu.memory_space<vmem>>, vector<1x128xf32>
    %73 = vector.broadcast %72 : vector<1x128xf32> to vector<32x128xf32>
    %74 = arith.addf %71, %73 : vector<32x128xf32>
    %c0_31 = arith.constant 0 : index
    %c0_32 = arith.constant 0 : index
    %75 = vector.load %arg5[%c0_31, %c0_32] : memref<32x128xf32, #tpu.memory_space<vmem>>, vector<32x128xf32>
    tpu.vector_store %arg5[%c0_31, %c0_32], %74 {strides = array<i32>} : memref<32x128xf32, #tpu.memory_space<vmem>>, vector<32x128xf32>,
    return
  }
}

</mosaic_0001>

<bundles_post_ra>
// kernel: tpu_custom_call.1
= control target key start
LH: loop header
LB: loop body
LE: loop exit
PB: predicated region body
PF: predicated region fallthrough
CT: control target
= control target key end

     0   :  { %10 = vsyncpa [#allocation6], 0  ;;  %s1969_s0 = inlined_call_operand.vmem [shape: f32[32,8], index: 0, kind: input, shape index: {}]   ;;  %s1970_s1 = inlined_call_operand.hbm [shape: bf16[8,512], index: 1, kind: input, shape index: {}]   ;;  %s1971_s2 = inlined_call_operand.vmem [shape: f32[8,512], index: 2, kind: input, shape index: {}]   ;;  %s1972_s3 = inlined_call_operand.hbm [shape: bf16[512,512], index: 3, kind: input, shape index: {}]   ;;  %s1973_s4 = inlined_call_operand.hbm [shape: bf16[512,128], index: 4, kind: input, shape index: {}]   ;;  %s1974_s5 = inlined_call_operand.hbm [shape: f32[32,128], index: 5, kind: output, shape index: {}]  }
   0x1   :  { %11 = vsyncpa [#allocation7], 0  ;;  %s1495_s18 = smov [#allocation5]   ;;  %s1421_s22 = scalar_lea.hbm %s1970_s1, 256 }
   0x2   :  { %s20_s19 = sshll.u32 %s1495_s18, 4  ;;  %p1422_p0 = scmp.ne.s32.totalorder %s1970_s1, %s1421_s22  ;;  %s21_s19 = int_to_ptr.vmem [resolvable:$true] %s20_s19 }
   0x3   :  { %p1425_p1 = scmp.lt.u32.totalorder %s1421_s22, %s1970_s1 }
   0x5   :  { %p1427_p2 = pnand %p1425_p1, %p1422_p0 }
   0x7   :  { %1430 = shalt.err (!%p1427_p2)
}
   0x8   :  { %s1431_s27 = scalar_lea.vmem %s21_s19, 256  ;;  %p1436_p4 = scmp.lt.s32.totalorder %s21_s19, %s21_s19 }
   0x9   :  { %p1432_p3 = scmp.ne.s32.totalorder %s21_s19, %s1431_s27  ;;  %p1437_p5 = scmp.lt.s32.totalorder %s1431_s27, %s1431_s27 }
   0xb   :  { %p1438_p6 = por %p1437_p5, %p1436_p4 }
   0xd   :  { %p1439_p7 = pnand %p1438_p6, %p1432_p3 }
   0xf   :  { %1442 = shalt.err (!%p1439_p7)
}
  0x10   :  { %23 = dma.hbm_to_vmem [thread:$0]  %s1970_s1, 256, %s21_s19, [#allocation6]  }
  0x11   :  { %1487 = dma.done.wait [#allocation6], 256  }
  0x12   :  { %1488 = vsyncadd [#allocation6], 4294967040  ;;  %s34_s30 = sld [smem:[#allocation0]]   ;;  %s1496_s6 = smov 512   ;;  %v1497_v0 = vmov 0   ;;  %vm102_vm0 = vcmask 1043456  }
  0x13   :  { %46 = sst [smem:[#allocation10]] %s1496_s6  ;;  %147 = vmatprep.mubr.bf16.mxu0 %v1497_v0  ;;  %200 = vmatprep.mubr.bf16.mxu1 %v1497_v0  ;;  %s1498_s7 = smov 4   ;;  %vm95_vm1 = vcmask 64512  }
  0x14   :  { %48 = sst [smem:[#allocation10 + $0x1]] %s1496_s6  ;;  %s1499_s8 = smov 64  }
  0x15   :  { %50 = sst [smem:[#allocation10 + $0x2]] %s1498_s7  ;;  %s1500_s9 = smov 128  }
  0x16   :  { %52 = sst [smem:[#allocation10 + $0x3]] %s1499_s8  ;;  %s1501_s10 = smov 2  }
  0x17   :  { %54 = sst [smem:[#allocation10 + $0x4]] %s1500_s9  ;;  %s1502_s1 = smov 256  }
  0x18   :  { %56 = sst [smem:[#allocation10 + $0x5]] %s1501_s10  ;;  %s1297_s11 = sshll.u32 %s34_s30, 26 }
  0x19   :  { %58 = sst [smem:[#allocation10 + $0x6]] %s1502_s1  ;;  %s1298_s12 = sadd.s32 134217728, %s1297_s11 }
  0x1a   :  { %60 = sst [smem:[#allocation10 + $0x7]] %s1499_s8  ;;  %s1503_s13 = smov [#allocation2]  }
  0x1b   :  { %62 = sst [smem:[#allocation10 + $0x8]] %s1498_s7  ;;  %s42_s14 = sshll.u32 %s1503_s13, 4  ;;  %s43_s14 = int_to_ptr.vmem [resolvable:$true] %s42_s14 }
  0x1c   :  { %s1504_s15 = smov [#allocation4]   ;;  %s1505_s16 = smov [#allocation9]  }
  0x1d   :  { %64 = dma.general %s1972_s3, 16384, %s43_s14, %s1504_s15, %s1505_s16, [#allocation10], %s1298_s12, 0  }
  0x1e   :  { %v83_v1 = vld [vmem:[#allocation5] sm:$0xff]  ;;  %v84_v2 = vld [vmem:[#allocation5 + $0x8] sm:$0xff]  ;;  %v79_v12 = vld [vmem:[%s1969_s0 + $0x10] sm:$0xff]  ;;  %s1506_s26 = smov [#allocation3]   ;;  %s1443_s30 = scalar_lea.hbm %s1973_s4, 4096 }
  0x1f   :  { %v77_v3 = vld [vmem:[%s1969_s0] sm:$0xff]  ;;  %v1300_v4 = vcombine.high %v83_v1, %v83_v1  ;;  %v1302_v5 = vcombine.high %v84_v2, %v84_v2  ;;  %v1299_v6 = vcombine.low %v83_v1, %v83_v1  ;;  %v1301_v7 = vcombine.low %v84_v2, %v84_v2  ;;  %v78_v8 = vld [vmem:[%s1969_s0 + $0x8] sm:$0xff]  ;;  %v80_v13 = vld [vmem:[%s1969_s0 + $0x18] sm:$0xff]  ;;  %s73_s27 = sshll.u32 %s1506_s26, 4  ;;  %p1444_p8 = scmp.ne.s32.totalorder %s1973_s4, %s1443_s30  ;;  %s74_s27 = int_to_ptr.vmem [resolvable:$true] %s73_s27 }
  0x20   :  { %v81_v11 = vpack.c.bf16 %v78_v8, %v77_v3  ;;  %v82_v14 = vpack.c.bf16 %v80_v13, %v79_v12  ;;  %p1447_p9 = scmp.lt.u32.totalorder %s1443_s30, %s1973_s4 }
  0x21   :  { %1303 = vmatprep.subr.msk.bf16.mxu0 %vm102_vm0, %v1300_v4  ;;  %1306 = vmatprep.subr.msk.bf16.mxu1 %vm102_vm0, %v1302_v5  ;;  %v104_v9 = vsel %vm102_vm0, %v1299_v6, 0  ;;  %v110_v10 = vsel %vm102_vm0, %v1301_v7, 0 }
  0x22   :  { %116 = vmatpush1.bf16.msra.mxu0 %v104_v9  ;;  %169 = vmatpush1.bf16.msra.mxu1 %v110_v10  ;;  %p1449_p10 = pnand %p1447_p9, %p1444_p8 }
  0x25   :  { %1304 = vmatmul.mubr.msk.bf16.vlgmr.msra.gmra.mrb[0].mxu0 %vm95_vm1, %v81_v11  ;;  %1307 = vmatmul.mubr.msk.bf16.vlgmr.msra.gmra.mrb[0].mxu1 %vm95_vm1, %v81_v11 }
  0x26   :  { %157 = vmatprep.mubr.bf16.mxu0 %v1497_v0  ;;  %210 = vmatprep.mubr.bf16.mxu1 %v1497_v0 }
  0x2d   :  { %1305 = vmatmul.mubr.msk.bf16.gmra.mrb[4].mxu0 %vm95_vm1, %v82_v14  ;;  %1308 = vmatmul.mubr.msk.bf16.gmra.mrb[4].mxu1 %vm95_vm1, %v82_v14 }
  0x2e   :  { %1452 = shalt.err (!%p1449_p10)  }
  0x2f   :  { %s1453_s0 = scalar_lea.vmem %s74_s27, 4096  ;;  %p1458_p12 = scmp.lt.s32.totalorder %s74_s27, %s74_s27 }
  0x30   :  { %p1454_p11 = scmp.ne.s32.totalorder %s74_s27, %s1453_s0  ;;  %p1459_p13 = scmp.lt.s32.totalorder %s1453_s0, %s1453_s0 }
  0x32   :  { %p1460_p0 = por %p1459_p13, %p1458_p12 }
  0x34   :  { %p1461_p1 = pnand %p1460_p0, %p1454_p11 }
  0x36   :  { %1464 = shalt.err (!%p1461_p1)  }
  0x37   :  { %76 = dma.hbm_to_vmem [thread:$0]  %s1973_s4, 4096, %s74_s27, [#allocation4 + $0x1] }
  0xf8   :  { %v1580_v15 = vpop.f32.mrb[0].mxu0  ;;  %v1582_v16 = vpop.f32.mrb[0].mxu1 }
  0xf9   :  { %v1584_v17 = vpop.f32.mrb[1].mxu0  ;;  %v1586_v18 = vpop.f32.mrb[1].mxu1  ;;  %v265_v19 = vmul.f32 %v1580_v15, %v1580_v15  ;;  %v267_v20 = vmul.f32 %v1582_v16, %v1582_v16 }
  0xfa   :  { %v266_v21 = vmul.f32 %v1584_v17, %v1584_v17  ;;  %v268_v22 = vmul.f32 %v1586_v18, %v1586_v18  ;;  %v1596_v23 = vpop.f32.mrb[2].mxu0  ;;  %v1598_v24 = vpop.f32.mrb[2].mxu1 }
  0xfb   :  { %v224_v25 = vadd.f32 %v1596_v23, %v1580_v15  ;;  %v269_v26 = vmul.f32 %v1596_v23, %v1596_v23  ;;  %v242_v27 = vadd.f32 %v1598_v24, %v1582_v16  ;;  %v271_v28 = vmul.f32 %v1598_v24, %v1598_v24  ;;  %v1608_v29 = vpop.f32.mrb[3].mxu0  ;;  %v1610_v30 = vpop.f32.mrb[3].mxu1 }
  0xfc   :  { %v233_v31 = vadd.f32 %v1608_v29, %v1584_v17  ;;  %v270_v32 = vmul.f32 %v1608_v29, %v1608_v29  ;;  %v251_v33 = vadd.f32 %v1610_v30, %v1586_v18  ;;  %v272_v34 = vmul.f32 %v1610_v30, %v1610_v30 }
  0xfd   :  { %v281_v35 = vadd.f32 %v269_v26, %v265_v19  ;;  %v299_v36 = vadd.f32 %v271_v28, %v267_v20 }
  0xfe   :  { %v290_v37 = vadd.f32 %v270_v32, %v266_v21  ;;  %v308_v38 = vadd.f32 %v272_v34, %v268_v22 }
 0x100   :  { %v1620_v39 = vpop.f32.mrb[4].mxu0  ;;  %v1622_v40 = vpop.f32.mrb[4].mxu1 }
 0x101   :  { %v225_v41 = vadd.f32 %v224_v25, %v1620_v39  ;;  %v273_v42 = vmul.f32 %v1620_v39, %v1620_v39  ;;  %v243_v43 = vadd.f32 %v242_v27, %v1622_v40  ;;  %v275_v44 = vmul.f32 %v1622_v40, %v1622_v40  ;;  %v1630_v45 = vpop.f32.mrb[5].mxu0  ;;  %v1632_v46 = vpop.f32.mrb[5].mxu1 }
 0x102   :  { %v234_v47 = vadd.f32 %v233_v31, %v1630_v45  ;;  %v274_v48 = vmul.f32 %v1630_v45, %v1630_v45  ;;  %v252_v49 = vadd.f32 %v251_v33, %v1632_v46  ;;  %v276_v50 = vmul.f32 %v1632_v46, %v1632_v46  ;;  %v1640_v51 = vpop.f32.mrb[6].mxu0  ;;  %v1642_v52 = vpop.f32.mrb[6].mxu1 }
 0x103   :  { %v282_v53 = vadd.f32 %v281_v35, %v273_v42  ;;  %v300_v54 = vadd.f32 %v299_v36, %v275_v44  ;;  %v226_v55 = vadd.f32 %v225_v41, %v1640_v51  ;;  %v277_v56 = vmul.f32 %v1640_v51, %v1640_v51  ;;  %v1647_v57 = vpop.f32.mrb[7].mxu0  ;;  %v1649_v58 = vpop.f32.mrb[7].mxu1 }
 0x104   :  { %v291_v59 = vadd.f32 %v290_v37, %v274_v48  ;;  %v309_v60 = vadd.f32 %v308_v38, %v276_v50  ;;  %v244_v61 = vadd.f32 %v243_v43, %v1642_v52  ;;  %v279_v62 = vmul.f32 %v1642_v52, %v1642_v52 }
 0x105   :  { %v227_v63 = vrot.slane %v226_v55, 4  ;;  %v283_v0 = vadd.f32 %v282_v53, %v277_v56  ;;  %v235_v1 = vadd.f32 %v234_v47, %v1647_v57  ;;  %v278_v2 = vmul.f32 %v1647_v57, %v1647_v57 }
 0x106   :  { %v245_v3 = vrot.slane %v244_v61, 4  ;;  %v301_v4 = vadd.f32 %v300_v54, %v279_v62  ;;  %v253_v5 = vadd.f32 %v252_v49, %v1649_v58  ;;  %v280_v6 = vmul.f32 %v1649_v58, %v1649_v58 }
 0x107   :  { %v228_v7 = vadd.f32 %v227_v63, %v226_v55  ;;  %v284_v8 = vrot.slane %v283_v0, 4  ;;  %v236_v9 = vrot.slane %v235_v1, 4  ;;  %v292_v10 = vadd.f32 %v291_v59, %v278_v2 }
 0x108   :  { %v246_v11 = vadd.f32 %v245_v3, %v244_v61  ;;  %v302_v12 = vrot.slane %v301_v4, 4  ;;  %v254_v13 = vrot.slane %v253_v5, 4  ;;  %v310_v14 = vadd.f32 %v309_v60, %v280_v6 }
 0x109   :  { %v229_v19 = vrot.slane %v228_v7, 2  ;;  %v285_v20 = vadd.f32 %v284_v8, %v283_v0  ;;  %v237_v21 = vadd.f32 %v236_v9, %v235_v1  ;;  %v293_v22 = vrot.slane %v292_v10, 4 }
 0x10a   :  { %v247_v25 = vrot.slane %v246_v11, 2  ;;  %v303_v26 = vadd.f32 %v302_v12, %v301_v4  ;;  %v255_v27 = vadd.f32 %v254_v13, %v253_v5  ;;  %v311_v28 = vrot.slane %v310_v14, 4 }
 0x10b   :  { %v230_v31 = vadd.f32 %v229_v19, %v228_v7  ;;  %v286_v32 = vrot.slane %v285_v20, 2  ;;  %v238_v33 = vrot.slane %v237_v21, 2  ;;  %v294_v34 = vadd.f32 %v293_v22, %v292_v10 }
 0x10c   :  { %v248_v35 = vadd.f32 %v247_v25, %v246_v11  ;;  %v304_v36 = vrot.slane %v303_v26, 2  ;;  %v256_v37 = vrot.slane %v255_v27, 2  ;;  %v312_v38 = vadd.f32 %v311_v28, %v310_v14 }
 0x10d   :  { %v231_v41 = vrot.slane %v230_v31, 1  ;;  %v287_v42 = vadd.f32 %v286_v32, %v285_v20  ;;  %v239_v43 = vadd.f32 %v238_v33, %v237_v21  ;;  %v295_v44 = vrot.slane %v294_v34, 2 }
 0x10e   :  { %v249_v47 = vrot.slane %v248_v35, 1  ;;  %v305_v48 = vadd.f32 %v304_v36, %v303_v26  ;;  %v257_v49 = vadd.f32 %v256_v37, %v255_v27  ;;  %v313_v50 = vrot.slane %v312_v38, 2 }
 0x10f   :  { %v232_v53 = vadd.f32 %v231_v41, %v230_v31  ;;  %v288_v54 = vrot.slane %v287_v42, 1  ;;  %v240_v55 = vrot.slane %v239_v43, 1  ;;  %v296_v56 = vadd.f32 %v295_v44, %v294_v34 }
 0x110   :  { %v250_v59 = vadd.f32 %v249_v47, %v248_v35  ;;  %v306_v60 = vrot.slane %v305_v48, 1  ;;  %v258_v61 = vrot.slane %v257_v49, 1  ;;  %v314_v62 = vadd.f32 %v313_v50, %v312_v38 }
 0x111   :  { %v261_v63 = vmul.f32 0.03125, %v232_v53  ;;  %v289_v0 = vadd.f32 %v288_v54, %v287_v42  ;;  %v241_v1 = vadd.f32 %v240_v55, %v239_v43  ;;  %v297_v2 = vrot.slane %v296_v56, 1 }
 0x112   :  { %v263_v3 = vmul.f32 0.03125, %v250_v59  ;;  %v307_v4 = vadd.f32 %v306_v60, %v305_v48  ;;  %v259_v5 = vadd.f32 %v258_v61, %v257_v49  ;;  %v315_v6 = vrot.slane %v314_v62, 1 }
 0x113   :  { %v317_v7 = vmul.f32 0.03125, %v289_v0  ;;  %v321_v8 = vmul.f32 %v261_v63, %v261_v63  ;;  %v262_v9 = vmul.f32 0.03125, %v241_v1  ;;  %v298_v10 = vadd.f32 %v297_v2, %v296_v56 }
 0x114   :  { %v319_v11 = vmul.f32 0.03125, %v307_v4  ;;  %v323_v12 = vmul.f32 %v263_v3, %v263_v3  ;;  %v264_v13 = vmul.f32 0.03125, %v259_v5  ;;  %v316_v14 = vadd.f32 %v315_v6, %v314_v62  ;;  %v221_v62 = vld [vmem:[%s1971_s2] ss:$8 sm:$0xf] }
 0x115   :  { %v325_v19 = vsub.f32 %v317_v7, %v321_v8  ;;  %v318_v20 = vmul.f32 0.03125, %v298_v10  ;;  %v322_v21 = vmul.f32 %v262_v9, %v262_v9  ;;  %v1507_v41 = vmov 1966171168  }
 0x116   :  { %v327_v22 = vsub.f32 %v319_v11, %v323_v12  ;;  %v320_v25 = vmul.f32 0.03125, %v316_v14  ;;  %v324_v26 = vmul.f32 %v264_v13, %v264_v13  ;;  %v348_v42 = vunpack.c.l.s4 %v1507_v41 }
 0x117   :  { %v329_v27 = vmax.f32 %v325_v19, 0.0  ;;  %v326_v28 = vsub.f32 %v318_v20, %v322_v21  ;;  %v350_v43 = vlaneseq }
 0x118   :  { %v331_v31 = vmax.f32 %v327_v22, 0.0  ;;  %v328_v32 = vsub.f32 %v320_v25, %v324_v26  ;;  %v349_v44 = vunpack.c.0.s8 %v348_v42 }
 0x119   :  { %v333_v33 = vadd.f32 1e-05, %v329_v27  ;;  %v330_v34 = vmax.f32 %v326_v28, 0.0  ;;  %v351_v47 = vshrl.u32 %v350_v43, 7 }
 0x11a   :  { %v335_v35 = vadd.f32 1e-05, %v331_v31  ;;  %v332_v36 = vmax.f32 %v328_v32, 0.0 }
 0x11b   :  { %1405 = vrsqrt.f32 %v333_v33  ;;  %v334_v37 = vadd.f32 1e-05, %v330_v34  ;;  %v1660_v50 = vsub.s32 %v349_v44, %v351_v47  ;;  %v1667_v0 = vsub.s32 0, %v351_v47 }
 0x11c   :  { %1407 = vrsqrt.f32 %v335_v35  ;;  %v336_v38 = vadd.f32 1e-05, %v332_v36  ;;  %v1670_v2 = vsub.s32 1, %v351_v47  ;;  %v1672_v4 = vsub.s32 2, %v351_v47 }
 0x11d   :  { %1409 = vrsqrt.f32 %v334_v37  ;;  %v1674_v5 = vsub.s32 3, %v351_v47 }
 0x11e   :  { %1411 = vrsqrt.f32 %v336_v38 }
 0x125   :  { %v1406_v48 = vpop.eup %1405 }
 0x126   :  { %v1408_v49 = vpop.eup %1407 }
 0x127   :  { %v1410_v53 = vpop.eup %1409 }
 0x128   :  { %v1412_v54 = vpop.eup %1411  ;;  %v345_v55 = vcombine.low %v1406_v48, %v1410_v53 }
 0x129   :  { %v346_v56 = vcombine.low %v1408_v49, %v1412_v54 }
 0x12a   :  { %v353_v59 = vrot.slane %v345_v55, %v1660_v50 }
 0x12b   :  { %v360_v60 = vrot.slane %v346_v56, %v1660_v50 }
 0x12d   :  { %v361_v61 = vcombine.low %v353_v59, %v360_v60 }
 0x12f   :  { %v368_v1 = vrot.slane %v361_v61, %v1660_v50 }
 0x131   :  { %v370_v6 = vmul.f32 %v368_v1, %v221_v62 }
 0x133   :  { %v375_v7 = vrot.slane %v370_v6, %v1667_v0  ;;  %v379_v8 = vrot.slane %v370_v6, %v1670_v2  ;;  %v383_v10 = vrot.slane %v370_v6, %v1672_v4  ;;  %v387_v11 = vrot.slane %v370_v6, %v1674_v5 }
 0x135   :  { %v392_v12 = vmul.f32 %v375_v7, %v261_v63  ;;  %v393_v14 = vmul.f32 %v379_v8, %v262_v9  ;;  %v394_v19 = vmul.f32 %v383_v10, %v263_v3  ;;  %v395_v20 = vmul.f32 %v387_v11, %v264_v13 }
 0x136   :  { %v426_v21 = vmul.f32 %v375_v7, %v1580_v15  ;;  %v427_v22 = vmul.f32 %v379_v8, %v1584_v17  ;;  %v428_v25 = vmul.f32 %v383_v10, %v1582_v16  ;;  %v429_v26 = vmul.f32 %v387_v11, %v1586_v18 }
 0x137   :  { %v400_v27 = vcombine.low %v392_v12, %v393_v14  ;;  %v401_v28 = vcombine.low %v394_v19, %v395_v20  ;;  %v430_v31 = vmul.f32 %v375_v7, %v1596_v23  ;;  %v431_v32 = vmul.f32 %v379_v8, %v1608_v29 }
 0x138   :  { %v432_v33 = vmul.f32 %v383_v10, %v1598_v24  ;;  %v433_v63 = vmul.f32 %v387_v11, %v1610_v30  ;;  %v434_v3 = vmul.f32 %v375_v7, %v1620_v39  ;;  %v435_v15 = vmul.f32 %v379_v8, %v1630_v45  ;;  %v1309_v39 = vld [vmem:[%s1971_s2 + $0x1] ss:$8 sm:$0xf] }
 0x139   :  { %v408_v17 = vrot.slane %v400_v27, %v1660_v50  ;;  %v415_v16 = vrot.slane %v401_v28, %v1660_v50  ;;  %v436_v18 = vmul.f32 %v383_v10, %v1622_v40  ;;  %v437_v9 = vmul.f32 %v387_v11, %v1632_v46 }
 0x13a   :  { %v438_v23 = vmul.f32 %v375_v7, %v1640_v51  ;;  %v439_v29 = vmul.f32 %v379_v8, %v1647_v57  ;;  %v440_v24 = vmul.f32 %v383_v10, %v1642_v52  ;;  %v441_v30 = vmul.f32 %v387_v11, %v1649_v58 }
 0x13b   :  { %v416_v13 = vcombine.low %v408_v17, %v415_v16 }
 0x13d   :  { %v423_v45 = vrot.slane %v416_v13, %v1660_v50 }
 0x13f   :  { %v425_v34 = vsub.f32 %v1309_v39, %v423_v45 }
 0x141   :  { %v446_v40 = vrot.slane %v425_v34, %v1667_v0  ;;  %v450_v46 = vrot.slane %v425_v34, %v1670_v2  ;;  %v454_v51 = vrot.slane %v425_v34, %v1672_v4  ;;  %v458_v57 = vrot.slane %v425_v34, %v1674_v5 }
 0x143   :  { %v1706_v35 = vadd.f32 %v446_v40, %v426_v21  ;;  %v464_v52 = vadd.f32 %v450_v46, %v427_v22  ;;  %v1708_v58 = vadd.f32 %v454_v51, %v428_v25  ;;  %v1710_v36 = vadd.f32 %v458_v57, %v429_v26 }
 0x144   :  { %v1712_v37 = vadd.f32 %v446_v40, %v430_v31  ;;  %v468_v38 = vadd.f32 %v450_v46, %v431_v32  ;;  %v1714_v41 = vadd.f32 %v454_v51, %v432_v33  ;;  %v1716_v42 = vadd.f32 %v458_v57, %v433_v63 }
 0x145   :  { %v1718_v43 = vadd.f32 %v446_v40, %v434_v3  ;;  %v1720_v44 = vadd.f32 %v450_v46, %v435_v15  ;;  %v1722_v47 = vadd.f32 %v454_v51, %v436_v18  ;;  %v1724_v48 = vadd.f32 %v458_v57, %v437_v9 }
 0x146   :  { %v1726_v49 = vadd.f32 %v446_v40, %v438_v23  ;;  %v1728_v53 = vadd.f32 %v450_v46, %v439_v29  ;;  %v1730_v54 = vadd.f32 %v454_v51, %v440_v24  ;;  %v1732_v55 = vadd.f32 %v458_v57, %v441_v30 }
 0x147   :  { %v479_v56 = vmax.f32 %v1706_v35, 0.0  ;;  %v480_v59 = vmax.f32 %v464_v52, 0.0  ;;  %v481_v60 = vmax.f32 %v1708_v58, 0.0  ;;  %v482_v61 = vmax.f32 %v1710_v36, 0.0 }
 0x148   :  { %v483_v62 = vmax.f32 %v1712_v37, 0.0  ;;  %v484_v1 = vmax.f32 %v468_v38, 0.0  ;;  %v485_v6 = vmax.f32 %v1714_v41, 0.0  ;;  %v486_v7 = vmax.f32 %v1716_v42, 0.0 }
 0x149   :  { %v487_v8 = vmax.f32 %v1718_v43, 0.0  ;;  %v488_v10 = vmax.f32 %v1720_v44, 0.0  ;;  %v489_v11 = vmax.f32 %v1722_v47, 0.0  ;;  %v490_v12 = vmax.f32 %v1724_v48, 0.0 }
 0x14a   :  { %v491_v14 = vmax.f32 %v1726_v49, 0.0  ;;  %v492_v19 = vmax.f32 %v1728_v53, 0.0  ;;  %v493_v20 = vmax.f32 %v1730_v54, 0.0  ;;  %v494_v21 = vmax.f32 %v1732_v55, 0.0 }
 0x14b   :  { %1489 = dma.done.wait [#allocation4], 16384 }
 0x14c   :  { %1490 = vsyncadd [#allocation4], 4294950912  ;;  %v500_v22 = vpack.c.bf16 %v484_v1, %v480_v59  ;;  %v508_v25 = vld [vmem:[#allocation2 + $0x8] sm:$0xff]  ;;  %v510_v26 = vld [vmem:[#allocation2 + $0x18] sm:$0xff]  ;;  %v503_v44 = vpack.c.bf16 %v491_v14, %v487_v8 }
 0x14d   :  { %v507_v27 = vld [vmem:[#allocation2] sm:$0xff]  ;;  %635 = vmatprep.subr.bf16.mxu0 %v508_v25  ;;  %741 = vmatprep.subr.bf16.mxu1 %v510_v26  ;;  %v509_v28 = vld [vmem:[#allocation2 + $0x10] sm:$0xff]  ;;  %v512_v31 = vld [vmem:[#allocation2 + $0x28] sm:$0xff] }
 0x14e   :  { %667 = vmatprep.mubr.bf16.mxu0 %v500_v22  ;;  %773 = vmatprep.mubr.bf16.mxu1 %v500_v22  ;;  %v514_v32 = vld [vmem:[#allocation2 + $0x38] sm:$0xff]  ;;  %v511_v33 = vld [vmem:[#allocation2 + $0x20] sm:$0xff]  ;;  %v513_v63 = vld [vmem:[#allocation2 + $0x30] sm:$0xff] }
 0x14f   :  { %636 = vmatpush1.bf16.msra.mxu0 %v507_v27  ;;  %742 = vmatpush1.bf16.msra.mxu1 %v509_v28  ;;  %v516_v3 = vld [vmem:[#allocation2 + $0x48] sm:$0xff]  ;;  %v518_v15 = vld [vmem:[#allocation2 + $0x58] sm:$0xff]  ;;  %v515_v17 = vld [vmem:[#allocation2 + $0x40] sm:$0xff] }
 0x150   :  { %637 = vmatprep.subr.bf16.mxu0 %v512_v31  ;;  %743 = vmatprep.subr.bf16.mxu1 %v514_v32  ;;  %v517_v16 = vld [vmem:[#allocation2 + $0x50] sm:$0xff]  ;;  %v520_v18 = vld [vmem:[#allocation2 + $0x68] sm:$0xff]  ;;  %v522_v9 = vld [vmem:[#allocation2 + $0x78] sm:$0xff] }
 0x151   :  { %v519_v23 = vld [vmem:[#allocation2 + $0x60] sm:$0xff]  ;;  %v521_v29 = vld [vmem:[#allocation2 + $0x70] sm:$0xff]  ;;  %v524_v24 = vld [vmem:[#allocation2 + $0x88] sm:$0xff] }
 0x152   :  { %v526_v30 = vld [vmem:[#allocation2 + $0x98] sm:$0xff]  ;;  %v523_v13 = vld [vmem:[#allocation2 + $0x80] sm:$0xff]  ;;  %v525_v39 = vld [vmem:[#allocation2 + $0x90] sm:$0xff] }
 0x153   :  { %638 = vmatpush1.bf16.msra.mxu0 %v511_v33  ;;  %744 = vmatpush1.bf16.msra.mxu1 %v513_v63  ;;  %v528_v45 = vld [vmem:[#allocation2 + $0xa8] sm:$0xff]  ;;  %v530_v34 = vld [vmem:[#allocation2 + $0xb8] sm:$0xff]  ;;  %v527_v40 = vld [vmem:[#allocation2 + $0xa0] sm:$0xff] }
 0x154   :  { %639 = vmatprep.subr.bf16.mxu0 %v516_v3  ;;  %745 = vmatprep.subr.bf16.mxu1 %v518_v15  ;;  %v529_v46 = vld [vmem:[#allocation2 + $0xb0] sm:$0xff]  ;;  %v532_v51 = vld [vmem:[#allocation2 + $0xc8] sm:$0xff]  ;;  %v534_v57 = vld [vmem:[#allocation2 + $0xd8] sm:$0xff] }
 0x155   :  { %v531_v52 = vld [vmem:[#allocation2 + $0xc0] sm:$0xff]  ;;  %v533_v38 = vld [vmem:[#allocation2 + $0xd0] sm:$0xff]  ;;  %v536_v59 = vld [vmem:[#allocation2 + $0xe8] sm:$0xff] }
 0x156   :  { %v538_v1 = vld [vmem:[#allocation2 + $0xf8] sm:$0xff]  ;;  %v535_v22 = vld [vmem:[#allocation2 + $0xe0] sm:$0xff]  ;;  %v537_v25 = vld [vmem:[#allocation2 + $0xf0] sm:$0xff] }
 0x157   :  { %640 = vmatpush1.bf16.msra.mxu0 %v515_v17  ;;  %746 = vmatpush1.bf16.msra.mxu1 %v517_v16  ;;  %v540_v26 = vld [vmem:[#allocation2 + $0x108] sm:$0xff]  ;;  %v542_v27 = vld [vmem:[#allocation2 + $0x118] sm:$0xff]  ;;  %v539_v28 = vld [vmem:[#allocation2 + $0x100] sm:$0xff] }
 0x158   :  { %641 = vmatprep.subr.bf16.mxu0 %v520_v18  ;;  %747 = vmatprep.subr.bf16.mxu1 %v522_v9  ;;  %v541_v31 = vld [vmem:[#allocation2 + $0x110] sm:$0xff]  ;;  %v544_v32 = vld [vmem:[#allocation2 + $0x128] sm:$0xff]  ;;  %v546_v33 = vld [vmem:[#allocation2 + $0x138] sm:$0xff] }
 0x159   :  { %v543_v63 = vld [vmem:[#allocation2 + $0x120] sm:$0xff]  ;;  %v545_v3 = vld [vmem:[#allocation2 + $0x130] sm:$0xff]  ;;  %v548_v15 = vld [vmem:[#allocation2 + $0x148] sm:$0xff] }
 0x15a   :  { %v550_v17 = vld [vmem:[#allocation2 + $0x158] sm:$0xff]  ;;  %v547_v16 = vld [vmem:[#allocation2 + $0x140] sm:$0xff]  ;;  %v549_v18 = vld [vmem:[#allocation2 + $0x150] sm:$0xff] }
 0x15b   :  { %642 = vmatpush1.bf16.msra.mxu0 %v519_v23  ;;  %748 = vmatpush1.bf16.msra.mxu1 %v521_v29  ;;  %v552_v9 = vld [vmem:[#allocation2 + $0x168] sm:$0xff]  ;;  %v554_v23 = vld [vmem:[#allocation2 + $0x178] sm:$0xff]  ;;  %v551_v29 = vld [vmem:[#allocation2 + $0x160] sm:$0xff] }
 0x15c   :  { %643 = vmatprep.subr.bf16.mxu0 %v524_v24  ;;  %749 = vmatprep.subr.bf16.mxu1 %v526_v30  ;;  %v553_v24 = vld [vmem:[#allocation2 + $0x170] sm:$0xff]  ;;  %v556_v30 = vld [vmem:[#allocation2 + $0x188] sm:$0xff]  ;;  %v575_v35 = vld [vmem:[#allocation2 + $0x220] sm:$0xff] }
 0x15d   :  { %v577_v37 = vld [vmem:[#allocation2 + $0x230] sm:$0xff]  ;;  %v579_v53 = vld [vmem:[#allocation2 + $0x240] sm:$0xff]  ;;  %v588_v8 = vld [vmem:[#allocation2 + $0x288] sm:$0xff] }
 0x15e   :  { %v583_v43 = vld [vmem:[#allocation2 + $0x260] sm:$0xff]  ;;  %v585_v49 = vld [vmem:[#allocation2 + $0x270] sm:$0xff]  ;;  %v590_v14 = vld [vmem:[#allocation2 + $0x298] sm:$0xff] }
 0x15f   :  { %644 = vmatpush1.bf16.msra.mxu0 %v523_v13  ;;  %750 = vmatpush1.bf16.msra.mxu1 %v525_v39  ;;  %v558_v13 = vld [vmem:[#allocation2 + $0x198] sm:$0xff]  ;;  %v555_v39 = vld [vmem:[#allocation2 + $0x180] sm:$0xff]  ;;  %v592_v42 = vld [vmem:[#allocation2 + $0x2a8] sm:$0xff] }
 0x160   :  { %645 = vmatprep.subr.bf16.mxu0 %v528_v45  ;;  %751 = vmatprep.subr.bf16.mxu1 %v530_v34  ;;  %v557_v45 = vld [vmem:[#allocation2 + $0x190] sm:$0xff]  ;;  %v560_v34 = vld [vmem:[#allocation2 + $0x1a8] sm:$0xff]  ;;  %v587_v36 = vld [vmem:[#allocation2 + $0x280] sm:$0xff] }
 0x163   :  { %646 = vmatpush1.bf16.msra.mxu0 %v527_v40  ;;  %752 = vmatpush1.bf16.msra.mxu1 %v529_v46  ;;  %v562_v40 = vld [vmem:[#allocation2 + $0x1b8] sm:$0xff]  ;;  %v559_v46 = vld [vmem:[#allocation2 + $0x1a0] sm:$0xff] }
 0x164   :  { %647 = vmatprep.subr.bf16.mxu0 %v532_v51  ;;  %753 = vmatprep.subr.bf16.mxu1 %v534_v57  ;;  %v561_v51 = vld [vmem:[#allocation2 + $0x1b0] sm:$0xff]  ;;  %v564_v57 = vld [vmem:[#allocation2 + $0x1c8] sm:$0xff] }
 0x167   :  { %648 = vmatpush1.bf16.msra.mxu0 %v531_v52  ;;  %754 = vmatpush1.bf16.msra.mxu1 %v533_v38  ;;  %v566_v52 = vld [vmem:[#allocation2 + $0x1d8] sm:$0xff]  ;;  %v563_v38 = vld [vmem:[#allocation2 + $0x1c0] sm:$0xff] }
 0x168   :  { %649 = vmatprep.subr.bf16.mxu0 %v536_v59  ;;  %755 = vmatprep.subr.bf16.mxu1 %v538_v1  ;;  %v565_v59 = vld [vmem:[#allocation2 + $0x1d0] sm:$0xff]  ;;  %v568_v1 = vld [vmem:[#allocation2 + $0x1e8] sm:$0xff] }
 0x16b   :  { %650 = vmatpush1.bf16.msra.mxu0 %v535_v22  ;;  %756 = vmatpush1.bf16.msra.mxu1 %v537_v25  ;;  %v570_v22 = vld [vmem:[#allocation2 + $0x1f8] sm:$0xff]  ;;  %v567_v25 = vld [vmem:[#allocation2 + $0x1e0] sm:$0xff] }
 0x16c   :  { %651 = vmatprep.subr.bf16.mxu0 %v540_v26  ;;  %757 = vmatprep.subr.bf16.mxu1 %v542_v27  ;;  %v569_v26 = vld [vmem:[#allocation2 + $0x1f0] sm:$0xff]  ;;  %v572_v27 = vld [vmem:[#allocation2 + $0x208] sm:$0xff] }
 0x16f   :  { %652 = vmatpush1.bf16.msra.mxu0 %v539_v28  ;;  %758 = vmatpush1.bf16.msra.mxu1 %v541_v31  ;;  %v574_v28 = vld [vmem:[#allocation2 + $0x218] sm:$0xff]  ;;  %v499_v31 = vpack.c.bf16 %v483_v62, %v479_v56  ;;  %v580_v56 = vld [vmem:[#allocation2 + $0x248] sm:$0xff] }
 0x170   :  { %653 = vmatprep.subr.bf16.mxu0 %v544_v32  ;;  %759 = vmatprep.subr.bf16.mxu1 %v546_v33  ;;  %v571_v32 = vld [vmem:[#allocation2 + $0x200] sm:$0xff]  ;;  %v573_v33 = vld [vmem:[#allocation2 + $0x210] sm:$0xff]  ;;  %v582_v62 = vld [vmem:[#allocation2 + $0x258] sm:$0xff] }
 0x173   :  { %654 = vmatpush1.bf16.msra.mxu0 %v543_v63  ;;  %760 = vmatpush1.bf16.msra.mxu1 %v545_v3  ;;  %v576_v63 = vld [vmem:[#allocation2 + $0x228] sm:$0xff]  ;;  %v578_v3 = vld [vmem:[#allocation2 + $0x238] sm:$0xff] }
 0x174   :  { %655 = vmatprep.subr.bf16.mxu0 %v548_v15  ;;  %761 = vmatprep.subr.bf16.mxu1 %v550_v17  ;;  %v504_v15 = vpack.c.bf16 %v492_v19, %v488_v10  ;;  %v581_v10 = vld [vmem:[#allocation2 + $0x250] sm:$0xff]  ;;  %v584_v19 = vld [vmem:[#allocation2 + $0x268] sm:$0xff]  ;;  %v586_v17 = vld [vmem:[#allocation2 + $0x278] sm:$0xff] }
 0x177   :  { %656 = vmatpush1.bf16.msra.mxu0 %v547_v16  ;;  %762 = vmatpush1.bf16.msra.mxu1 %v549_v18  ;;  %v502_v16 = vpack.c.bf16 %v486_v7, %v482_v61  ;;  %v589_v18 = vld [vmem:[#allocation2 + $0x290] sm:$0xff]  ;;  %v594_v61 = vld [vmem:[#allocation2 + $0x2b8] sm:$0xff]  ;;  %v591_v7 = vld [vmem:[#allocation2 + $0x2a0] sm:$0xff] }
 0x178   :  { %657 = vmatprep.subr.bf16.mxu0 %v552_v9  ;;  %763 = vmatprep.subr.bf16.mxu1 %v554_v23  ;;  %v593_v9 = vld [vmem:[#allocation2 + $0x2b0] sm:$0xff]  ;;  %v596_v23 = vld [vmem:[#allocation2 + $0x2c8] sm:$0xff] }
 0x17b   :  { %658 = vmatpush1.bf16.msra.mxu0 %v551_v29  ;;  %764 = vmatpush1.bf16.msra.mxu1 %v553_v24  ;;  %v598_v29 = vld [vmem:[#allocation2 + $0x2d8] sm:$0xff]  ;;  %v595_v24 = vld [vmem:[#allocation2 + $0x2c0] sm:$0xff] }
 0x17c   :  { %659 = vmatprep.subr.bf16.mxu0 %v556_v30  ;;  %765 = vmatprep.subr.bf16.mxu1 %v558_v13  ;;  %v597_v30 = vld [vmem:[#allocation2 + $0x2d0] sm:$0xff]  ;;  %v600_v13 = vld [vmem:[#allocation2 + $0x2e8] sm:$0xff] }
 0x17f   :  { %660 = vmatpush1.bf16.msra.mxu0 %v555_v39  ;;  %766 = vmatpush1.bf16.msra.mxu1 %v557_v45  ;;  %v602_v39 = vld [vmem:[#allocation2 + $0x2f8] sm:$0xff]  ;;  %v599_v45 = vld [vmem:[#allocation2 + $0x2e0] sm:$0xff] }
 0x180   :  { %661 = vmatprep.subr.bf16.mxu0 %v560_v34  ;;  %767 = vmatprep.subr.bf16.mxu1 %v562_v40  ;;  %v601_v34 = vld [vmem:[#allocation2 + $0x2f0] sm:$0xff]  ;;  %v604_v40 = vld [vmem:[#allocation2 + $0x308] sm:$0xff] }
 0x183   :  { %662 = vmatpush1.bf16.msra.mxu0 %v559_v46  ;;  %768 = vmatpush1.bf16.msra.mxu1 %v561_v51  ;;  %v606_v46 = vld [vmem:[#allocation2 + $0x318] sm:$0xff]  ;;  %v603_v51 = vld [vmem:[#allocation2 + $0x300] sm:$0xff] }
 0x184   :  { %663 = vmatprep.subr.bf16.mxu0 %v564_v57  ;;  %769 = vmatprep.subr.bf16.mxu1 %v566_v52  ;;  %v605_v57 = vld [vmem:[#allocation2 + $0x310] sm:$0xff]  ;;  %v608_v52 = vld [vmem:[#allocation2 + $0x328] sm:$0xff] }
 0x187   :  { %664 = vmatpush1.bf16.msra.mxu0 %v563_v38  ;;  %770 = vmatpush1.bf16.msra.mxu1 %v565_v59  ;;  %v610_v38 = vld [vmem:[#allocation2 + $0x338] sm:$0xff]  ;;  %v607_v59 = vld [vmem:[#allocation2 + $0x320] sm:$0xff] }
 0x188   :  { %665 = vmatprep.subr.bf16.mxu0 %v568_v1  ;;  %771 = vmatprep.subr.bf16.mxu1 %v570_v22  ;;  %v609_v1 = vld [vmem:[#allocation2 + $0x330] sm:$0xff]  ;;  %v612_v22 = vld [vmem:[#allocation2 + $0x348] sm:$0xff] }
 0x18b   :  { %666 = vmatpush1.bf16.msra.mxu0 %v567_v25  ;;  %772 = vmatpush1.bf16.msra.mxu1 %v569_v26  ;;  %v614_v25 = vld [vmem:[#allocation2 + $0x358] sm:$0xff]  ;;  %v611_v26 = vld [vmem:[#allocation2 + $0x340] sm:$0xff] }
 0x18c   :  { %688 = vmatprep.subr.bf16.mxu0 %v572_v27  ;;  %794 = vmatprep.subr.bf16.mxu1 %v574_v28  ;;  %v613_v27 = vld [vmem:[#allocation2 + $0x350] sm:$0xff]  ;;  %v616_v28 = vld [vmem:[#allocation2 + $0x368] sm:$0xff] }
 0x18e   :  { %668 = vmatmul.mubr.bf16.vlgmr.msra.gmra.mrb[8].mxu0 %v499_v31  ;;  %774 = vmatmul.mubr.bf16.vlgmr.msra.gmra.mrb[8].mxu1 %v499_v31  ;;  %v618_v31 = vld [vmem:[#allocation2 + $0x378] sm:$0xff] }
 0x18f   :  { %689 = vmatpush1.bf16.msra.mxu0 %v571_v32  ;;  %795 = vmatpush1.bf16.msra.mxu1 %v573_v33  ;;  %v615_v32 = vld [vmem:[#allocation2 + $0x360] sm:$0xff]  ;;  %v617_v33 = vld [vmem:[#allocation2 + $0x370] sm:$0xff] }
 0x190   :  { %690 = vmatprep.subr.bf16.mxu0 %v576_v63  ;;  %796 = vmatprep.subr.bf16.mxu1 %v578_v3  ;;  %v620_v63 = vld [vmem:[#allocation2 + $0x388] sm:$0xff]  ;;  %v622_v3 = vld [vmem:[#allocation2 + $0x398] sm:$0xff] }
 0x191   :  { %677 = vmatprep.mubr.bf16.mxu0 %v504_v15  ;;  %783 = vmatprep.mubr.bf16.mxu1 %v504_v15  ;;  %v619_v15 = vld [vmem:[#allocation2 + $0x380] sm:$0xff] }
 0x193   :  { %691 = vmatpush1.bf16.msra.mxu0 %v575_v35  ;;  %797 = vmatpush1.bf16.msra.mxu1 %v577_v37  ;;  %v621_v35 = vld [vmem:[#allocation2 + $0x390] sm:$0xff]  ;;  %v624_v37 = vld [vmem:[#allocation2 + $0x3a8] sm:$0xff] }
 0x194   :  { %692 = vmatprep.subr.bf16.mxu0 %v580_v56  ;;  %798 = vmatprep.subr.bf16.mxu1 %v582_v62  ;;  %v626_v56 = vld [vmem:[#allocation2 + $0x3b8] sm:$0xff]  ;;  %v623_v62 = vld [vmem:[#allocation2 + $0x3a0] sm:$0xff] }
 0x196   :  { %678 = vmatmul.mubr.bf16.gmra.mrb[12].mxu0 %v503_v44  ;;  %784 = vmatmul.mubr.bf16.gmra.mrb[12].mxu1 %v503_v44  ;;  %v625_v44 = vld [vmem:[#allocation2 + $0x3b0] sm:$0xff] }
 0x197   :  { %693 = vmatpush1.bf16.msra.mxu0 %v579_v53  ;;  %799 = vmatpush1.bf16.msra.mxu1 %v581_v10  ;;  %v628_v53 = vld [vmem:[#allocation2 + $0x3c8] sm:$0xff]  ;;  %v630_v10 = vld [vmem:[#allocation2 + $0x3d8] sm:$0xff] }
 0x198   :  { %694 = vmatprep.subr.bf16.mxu0 %v584_v19  ;;  %800 = vmatprep.subr.bf16.mxu1 %v586_v17  ;;  %v627_v19 = vld [vmem:[#allocation2 + $0x3c0] sm:$0xff]  ;;  %v629_v17 = vld [vmem:[#allocation2 + $0x3d0] sm:$0xff] }
 0x199   :  { %720 = vmatprep.mubr.bf16.mxu0 %v502_v16  ;;  %826 = vmatprep.mubr.bf16.mxu1 %v502_v16  ;;  %v632_v16 = vld [vmem:[#allocation2 + $0x3e8] sm:$0xff] }
 0x19b   :  { %695 = vmatpush1.bf16.msra.mxu0 %v583_v43  ;;  %801 = vmatpush1.bf16.msra.mxu1 %v585_v49  ;;  %v634_v43 = vld [vmem:[#allocation2 + $0x3f8] sm:$0xff]  ;;  %v631_v49 = vld [vmem:[#allocation2 + $0x3e0] sm:$0xff] }
 0x19c   :  { %696 = vmatprep.subr.bf16.mxu0 %v588_v8  ;;  %802 = vmatprep.subr.bf16.mxu1 %v590_v14  ;;  %v633_v8 = vld [vmem:[#allocation2 + $0x3f0] sm:$0xff]  ;;  %v501_v14 = vpack.c.bf16 %v485_v6, %v481_v60 }
 0x19f   :  { %697 = vmatpush1.bf16.msra.mxu0 %v587_v36  ;;  %803 = vmatpush1.bf16.msra.mxu1 %v589_v18  ;;  %v506_v36 = vpack.c.bf16 %v494_v21, %v490_v12  ;;  %v505_v18 = vpack.c.bf16 %v493_v20, %v489_v11 }
 0x1a0   :  { %698 = vmatprep.subr.bf16.mxu0 %v592_v42  ;;  %804 = vmatprep.subr.bf16.mxu1 %v594_v61 }
 0x1a3   :  { %699 = vmatpush1.bf16.msra.mxu0 %v591_v7  ;;  %805 = vmatpush1.bf16.msra.mxu1 %v593_v9 }
 0x1a4   :  { %700 = vmatprep.subr.bf16.mxu0 %v596_v23  ;;  %806 = vmatprep.subr.bf16.mxu1 %v598_v29 }
 0x1a7   :  { %701 = vmatpush1.bf16.msra.mxu0 %v595_v24  ;;  %807 = vmatpush1.bf16.msra.mxu1 %v597_v30 }
 0x1a8   :  { %702 = vmatprep.subr.bf16.mxu0 %v600_v13  ;;  %808 = vmatprep.subr.bf16.mxu1 %v602_v39 }
 0x1ab   :  { %703 = vmatpush1.bf16.msra.mxu0 %v599_v45  ;;  %809 = vmatpush1.bf16.msra.mxu1 %v601_v34 }
 0x1ac   :  { %704 = vmatprep.subr.bf16.mxu0 %v604_v40  ;;  %810 = vmatprep.subr.bf16.mxu1 %v606_v46 }
 0x1af   :  { %705 = vmatpush1.bf16.msra.mxu0 %v603_v51  ;;  %811 = vmatpush1.bf16.msra.mxu1 %v605_v57 }
 0x1b0   :  { %706 = vmatprep.subr.bf16.mxu0 %v608_v52  ;;  %812 = vmatprep.subr.bf16.mxu1 %v610_v38 }
 0x1b3   :  { %707 = vmatpush1.bf16.msra.mxu0 %v607_v59  ;;  %813 = vmatpush1.bf16.msra.mxu1 %v609_v1 }
 0x1b4   :  { %708 = vmatprep.subr.bf16.mxu0 %v612_v22  ;;  %814 = vmatprep.subr.bf16.mxu1 %v614_v25 }
 0x1b7   :  { %709 = vmatpush1.bf16.msra.mxu0 %v611_v26  ;;  %815 = vmatpush1.bf16.msra.mxu1 %v613_v27 }
 0x1b8   :  { %710 = vmatprep.subr.bf16.mxu0 %v616_v28  ;;  %816 = vmatprep.subr.bf16.mxu1 %v618_v31 }
 0x1bb   :  { %711 = vmatpush1.bf16.msra.mxu0 %v615_v32  ;;  %817 = vmatpush1.bf16.msra.mxu1 %v617_v33 }
 0x1bc   :  { %712 = vmatprep.subr.bf16.mxu0 %v620_v63  ;;  %818 = vmatprep.subr.bf16.mxu1 %v622_v3 }
 0x1bf   :  { %713 = vmatpush1.bf16.msra.mxu0 %v619_v15  ;;  %819 = vmatpush1.bf16.msra.mxu1 %v621_v35 }
 0x1c0   :  { %714 = vmatprep.subr.bf16.mxu0 %v624_v37  ;;  %820 = vmatprep.subr.bf16.mxu1 %v626_v56 }
 0x1c3   :  { %715 = vmatpush1.bf16.msra.mxu0 %v623_v62  ;;  %821 = vmatpush1.bf16.msra.mxu1 %v625_v44 }
 0x1c4   :  { %716 = vmatprep.subr.bf16.mxu0 %v628_v53  ;;  %822 = vmatprep.subr.bf16.mxu1 %v630_v10 }
 0x1c7   :  { %717 = vmatpush1.bf16.msra.mxu0 %v627_v19  ;;  %823 = vmatpush1.bf16.msra.mxu1 %v629_v17 }
 0x1c8   :  { %718 = vmatprep.subr.bf16.mxu0 %v632_v16  ;;  %824 = vmatprep.subr.bf16.mxu1 %v634_v43 }
 0x1cb   :  { %719 = vmatpush1.bf16.msra.mxu0 %v631_v49  ;;  %825 = vmatpush1.bf16.msra.mxu1 %v633_v8 }
 0x1ce   :  { %721 = vmatmul.mubr.bf16.vlgmr.msra.gmra.mrb[8].mxu0 %v501_v14  ;;  %827 = vmatmul.mubr.bf16.vlgmr.msra.gmra.mrb[8].mxu1 %v501_v14 }
 0x1cf   :  { %730 = vmatprep.mubr.bf16.mxu0 %v506_v36  ;;  %836 = vmatprep.mubr.bf16.mxu1 %v506_v36 }
 0x1d6   :  { %731 = vmatmul.mubr.bf16.gmra.mrb[12].mxu0 %v505_v18  ;;  %837 = vmatmul.mubr.bf16.gmra.mrb[12].mxu1 %v505_v18 }
 0x2a1   :  { %v1776_v58 = vpop.f32.mrb[8].mxu0  ;;  %v1778_v41 = vpop.f32.mrb[8].mxu1 }
 0x2a2   :  { %v1780_v60 = vpop.f32.mrb[9].mxu0  ;;  %v1782_v48 = vpop.f32.mrb[9].mxu1  ;;  %v891_v55 = vmul.f32 %v1776_v58, %v1776_v58  ;;  %v893_v6 = vmul.f32 %v1778_v41, %v1778_v41 }
 0x2a3   :  { %v892_v47 = vmul.f32 %v1780_v60, %v1780_v60  ;;  %v894_v54 = vmul.f32 %v1782_v48, %v1782_v48  ;;  %v1792_v11 = vpop.f32.mrb[10].mxu0  ;;  %v1794_v12 = vpop.f32.mrb[10].mxu1 }
 0x2a4   :  { %v851_v20 = vadd.f32 %v1792_v11, %v1776_v58  ;;  %v895_v21 = vmul.f32 %v1792_v11, %v1792_v11  ;;  %v869_v42 = vadd.f32 %v1794_v12, %v1778_v41  ;;  %v897_v61 = vmul.f32 %v1794_v12, %v1794_v12  ;;  %v1804_v7 = vpop.f32.mrb[11].mxu0  ;;  %v1806_v9 = vpop.f32.mrb[11].mxu1 }
 0x2a5   :  { %v860_v23 = vadd.f32 %v1804_v7, %v1780_v60  ;;  %v896_v29 = vmul.f32 %v1804_v7, %v1804_v7  ;;  %v878_v24 = vadd.f32 %v1806_v9, %v1782_v48  ;;  %v898_v30 = vmul.f32 %v1806_v9, %v1806_v9 }
 0x2a6   :  { %v907_v13 = vadd.f32 %v895_v21, %v891_v55  ;;  %v925_v39 = vadd.f32 %v897_v61, %v893_v6 }
 0x2a7   :  { %v916_v45 = vadd.f32 %v896_v29, %v892_v47  ;;  %v934_v34 = vadd.f32 %v898_v30, %v894_v54 }
 0x2a9   :  { %v1816_v40 = vpop.f32.mrb[12].mxu0  ;;  %v1818_v46 = vpop.f32.mrb[12].mxu1 }
 0x2aa   :  { %v852_v51 = vadd.f32 %v851_v20, %v1816_v40  ;;  %v899_v57 = vmul.f32 %v1816_v40, %v1816_v40  ;;  %v870_v52 = vadd.f32 %v869_v42, %v1818_v46  ;;  %v901_v38 = vmul.f32 %v1818_v46, %v1818_v46  ;;  %v1826_v59 = vpop.f32.mrb[13].mxu0  ;;  %v1828_v1 = vpop.f32.mrb[13].mxu1 }
 0x2ab   :  { %v861_v22 = vadd.f32 %v860_v23, %v1826_v59  ;;  %v900_v25 = vmul.f32 %v1826_v59, %v1826_v59  ;;  %v879_v26 = vadd.f32 %v878_v24, %v1828_v1  ;;  %v902_v27 = vmul.f32 %v1828_v1, %v1828_v1  ;;  %v1836_v28 = vpop.f32.mrb[14].mxu0  ;;  %v1838_v31 = vpop.f32.mrb[14].mxu1 }
 0x2ac   :  { %v908_v32 = vadd.f32 %v907_v13, %v899_v57  ;;  %v926_v33 = vadd.f32 %v925_v39, %v901_v38  ;;  %v853_v63 = vadd.f32 %v852_v51, %v1836_v28  ;;  %v903_v3 = vmul.f32 %v1836_v28, %v1836_v28  ;;  %v1843_v15 = vpop.f32.mrb[15].mxu0  ;;  %v1845_v35 = vpop.f32.mrb[15].mxu1 }
 0x2ad   :  { %v917_v37 = vadd.f32 %v916_v45, %v900_v25  ;;  %v935_v56 = vadd.f32 %v934_v34, %v902_v27  ;;  %v871_v62 = vadd.f32 %v870_v52, %v1838_v31  ;;  %v905_v44 = vmul.f32 %v1838_v31, %v1838_v31 }
 0x2ae   :  { %v854_v53 = vrot.slane %v853_v63, 4  ;;  %v909_v10 = vadd.f32 %v908_v32, %v903_v3  ;;  %v862_v19 = vadd.f32 %v861_v22, %v1843_v15  ;;  %v904_v17 = vmul.f32 %v1843_v15, %v1843_v15 }
 0x2af   :  { %v872_v16 = vrot.slane %v871_v62, 4  ;;  %v927_v43 = vadd.f32 %v926_v33, %v905_v44  ;;  %v880_v49 = vadd.f32 %v879_v26, %v1845_v35  ;;  %v906_v8 = vmul.f32 %v1845_v35, %v1845_v35 }
 0x2b0   :  { %v855_v14 = vadd.f32 %v854_v53, %v853_v63  ;;  %v910_v36 = vrot.slane %v909_v10, 4  ;;  %v863_v18 = vrot.slane %v862_v19, 4  ;;  %v918_v55 = vadd.f32 %v917_v37, %v904_v17 }
 0x2b1   :  { %v873_v6 = vadd.f32 %v872_v16, %v871_v62  ;;  %v928_v47 = vrot.slane %v927_v43, 4  ;;  %v881_v54 = vrot.slane %v880_v49, 4  ;;  %v936_v20 = vadd.f32 %v935_v56, %v906_v8 }
 0x2b2   :  { %v856_v21 = vrot.slane %v855_v14, 2  ;;  %v911_v42 = vadd.f32 %v910_v36, %v909_v10  ;;  %v864_v61 = vadd.f32 %v863_v18, %v862_v19  ;;  %v919_v23 = vrot.slane %v918_v55, 4 }
 0x2b3   :  { %v874_v29 = vrot.slane %v873_v6, 2  ;;  %v929_v24 = vadd.f32 %v928_v47, %v927_v43  ;;  %v882_v30 = vadd.f32 %v881_v54, %v880_v49  ;;  %v937_v13 = vrot.slane %v936_v20, 4 }
 0x2b4   :  { %v857_v39 = vadd.f32 %v856_v21, %v855_v14  ;;  %v912_v45 = vrot.slane %v911_v42, 2  ;;  %v865_v34 = vrot.slane %v864_v61, 2  ;;  %v920_v51 = vadd.f32 %v919_v23, %v918_v55 }
 0x2b5   :  { %v875_v57 = vadd.f32 %v874_v29, %v873_v6  ;;  %v930_v52 = vrot.slane %v929_v24, 2  ;;  %v883_v38 = vrot.slane %v882_v30, 2  ;;  %v938_v22 = vadd.f32 %v937_v13, %v936_v20 }
 0x2b6   :  { %v858_v25 = vrot.slane %v857_v39, 1  ;;  %v913_v26 = vadd.f32 %v912_v45, %v911_v42  ;;  %v866_v27 = vadd.f32 %v865_v34, %v864_v61  ;;  %v921_v32 = vrot.slane %v920_v51, 2 }
 0x2b7   :  { %v876_v33 = vrot.slane %v875_v57, 1  ;;  %v931_v63 = vadd.f32 %v930_v52, %v929_v24  ;;  %v884_v3 = vadd.f32 %v883_v38, %v882_v30  ;;  %v939_v37 = vrot.slane %v938_v22, 2 }
 0x2b8   :  { %v859_v56 = vadd.f32 %v858_v25, %v857_v39  ;;  %v914_v62 = vrot.slane %v913_v26, 1  ;;  %v867_v44 = vrot.slane %v866_v27, 1  ;;  %v922_v53 = vadd.f32 %v921_v32, %v920_v51 }
 0x2b9   :  { %v877_v10 = vadd.f32 %v876_v33, %v875_v57  ;;  %v932_v19 = vrot.slane %v931_v63, 1  ;;  %v885_v17 = vrot.slane %v884_v3, 1  ;;  %v940_v16 = vadd.f32 %v939_v37, %v938_v22 }
 0x2ba   :  { %v887_v43 = vmul.f32 0.03125, %v859_v56  ;;  %v915_v49 = vadd.f32 %v914_v62, %v913_v26  ;;  %v868_v8 = vadd.f32 %v867_v44, %v866_v27  ;;  %v923_v14 = vrot.slane %v922_v53, 1 }
 0x2bb   :  { %v889_v36 = vmul.f32 0.03125, %v877_v10  ;;  %v933_v18 = vadd.f32 %v932_v19, %v931_v63  ;;  %v886_v55 = vadd.f32 %v885_v17, %v884_v3  ;;  %v941_v6 = vrot.slane %v940_v16, 1  ;;  %v1310_v17 = vld [vmem:[%s1971_s2 + $0x2] ss:$8 sm:$0xf] }
 0x2bc   :  { %v943_v47 = vmul.f32 0.03125, %v915_v49  ;;  %v947_v54 = vmul.f32 %v887_v43, %v887_v43  ;;  %v888_v20 = vmul.f32 0.03125, %v868_v8  ;;  %v924_v21 = vadd.f32 %v923_v14, %v922_v53 }
 0x2bd   :  { %v945_v42 = vmul.f32 0.03125, %v933_v18  ;;  %v949_v61 = vmul.f32 %v889_v36, %v889_v36  ;;  %v890_v23 = vmul.f32 0.03125, %v886_v55  ;;  %v942_v29 = vadd.f32 %v941_v6, %v940_v16 }
 0x2be   :  { %v951_v24 = vsub.f32 %v943_v47, %v947_v54  ;;  %v944_v30 = vmul.f32 0.03125, %v924_v21  ;;  %v948_v13 = vmul.f32 %v888_v20, %v888_v20 }
 0x2bf   :  { %v953_v39 = vsub.f32 %v945_v42, %v949_v61  ;;  %v946_v45 = vmul.f32 0.03125, %v942_v29  ;;  %v950_v34 = vmul.f32 %v890_v23, %v890_v23 }
 0x2c0   :  { %v955_v51 = vmax.f32 %v951_v24, 0.0  ;;  %v952_v57 = vsub.f32 %v944_v30, %v948_v13 }
 0x2c1   :  { %v957_v52 = vmax.f32 %v953_v39, 0.0  ;;  %v954_v38 = vsub.f32 %v946_v45, %v950_v34 }
 0x2c2   :  { %v959_v22 = vadd.f32 1e-05, %v955_v51  ;;  %v956_v25 = vmax.f32 %v952_v57, 0.0 }
 0x2c3   :  { %v961_v26 = vadd.f32 1e-05, %v957_v52  ;;  %v958_v27 = vmax.f32 %v954_v38, 0.0 }
 0x2c4   :  { %1413 = vrsqrt.f32 %v959_v22  ;;  %v960_v32 = vadd.f32 1e-05, %v956_v25 }
 0x2c5   :  { %1415 = vrsqrt.f32 %v961_v26  ;;  %v962_v33 = vadd.f32 1e-05, %v958_v27 }
 0x2c6   :  { %1417 = vrsqrt.f32 %v960_v32 }
 0x2c7   :  { %1419 = vrsqrt.f32 %v962_v33 }
 0x2ce   :  { %v1414_v63 = vpop.eup %1413 }
 0x2cf   :  { %v1416_v3 = vpop.eup %1415 }
 0x2d0   :  { %v1418_v37 = vpop.eup %1417 }
 0x2d1   :  { %v1420_v56 = vpop.eup %1419  ;;  %v971_v62 = vcombine.low %v1414_v63, %v1418_v37 }
 0x2d2   :  { %v972_v44 = vcombine.low %v1416_v3, %v1420_v56 }
 0x2d3   :  { %v979_v53 = vrot.slane %v971_v62, %v1660_v50 }
 0x2d4   :  { %v986_v10 = vrot.slane %v972_v44, %v1660_v50 }
 0x2d6   :  { %v987_v19 = vcombine.low %v979_v53, %v986_v10 }
 0x2d8   :  { %v994_v16 = vrot.slane %v987_v19, %v1660_v50 }
 0x2da   :  { %v996_v49 = vmul.f32 %v1310_v17, %v994_v16 }
 0x2dc   :  { %v1001_v8 = vrot.slane %v996_v49, %v1667_v0  ;;  %v1005_v14 = vrot.slane %v996_v49, %v1670_v2  ;;  %v1009_v18 = vrot.slane %v996_v49, %v1672_v4  ;;  %v1013_v55 = vrot.slane %v996_v49, %v1674_v5 }
 0x2de   :  { %v1018_v6 = vmul.f32 %v1001_v8, %v887_v43  ;;  %v1019_v47 = vmul.f32 %v1005_v14, %v888_v20  ;;  %v1020_v54 = vmul.f32 %v1009_v18, %v889_v36  ;;  %v1021_v21 = vmul.f32 %v1013_v55, %v890_v23 }
 0x2df   :  { %v1052_v42 = vmul.f32 %v1001_v8, %v1776_v58  ;;  %v1053_v61 = vmul.f32 %v1005_v14, %v1780_v60  ;;  %v1054_v29 = vmul.f32 %v1009_v18, %v1778_v41  ;;  %v1055_v24 = vmul.f32 %v1013_v55, %v1782_v48 }
 0x2e0   :  { %v1026_v30 = vcombine.low %v1018_v6, %v1019_v47  ;;  %v1027_v13 = vcombine.low %v1020_v54, %v1021_v21  ;;  %v1056_v39 = vmul.f32 %v1001_v8, %v1792_v11  ;;  %v1057_v45 = vmul.f32 %v1005_v14, %v1804_v7 }
 0x2e1   :  { %v1058_v34 = vmul.f32 %v1009_v18, %v1794_v12  ;;  %v1059_v43 = vmul.f32 %v1013_v55, %v1806_v9  ;;  %v1060_v36 = vmul.f32 %v1001_v8, %v1816_v40  ;;  %v1061_v58 = vmul.f32 %v1005_v14, %v1826_v59  ;;  %v1311_v40 = vld [vmem:[%s1971_s2 + $0x3] ss:$8 sm:$0xf] }
 0x2e2   :  { %v1034_v60 = vrot.slane %v1026_v30, %v1660_v50  ;;  %v1041_v41 = vrot.slane %v1027_v13, %v1660_v50  ;;  %v1062_v48 = vmul.f32 %v1009_v18, %v1818_v46  ;;  %v1063_v20 = vmul.f32 %v1013_v55, %v1828_v1 }
 0x2e3   :  { %v1064_v11 = vmul.f32 %v1001_v8, %v1836_v28  ;;  %v1065_v7 = vmul.f32 %v1005_v14, %v1843_v15  ;;  %v1066_v12 = vmul.f32 %v1009_v18, %v1838_v31  ;;  %v1067_v9 = vmul.f32 %v1013_v55, %v1845_v35 }
 0x2e4   :  { %v1042_v23 = vcombine.low %v1034_v60, %v1041_v41 }
 0x2e6   :  { %v1049_v59 = vrot.slane %v1042_v23, %v1660_v50 }
 0x2e8   :  { %v1051_v51 = vsub.f32 %v1311_v40, %v1049_v59 }
 0x2ea   :  { %v1072_v46 = vrot.slane %v1051_v51, %v1667_v0  ;;  %v1076_v1 = vrot.slane %v1051_v51, %v1670_v2  ;;  %v1080_v28 = vrot.slane %v1051_v51, %v1672_v4  ;;  %v1084_v15 = vrot.slane %v1051_v51, %v1674_v5 }
 0x2ec   :  { %v1892_v57 = vadd.f32 %v1072_v46, %v1052_v42  ;;  %v1090_v31 = vadd.f32 %v1076_v1, %v1053_v61  ;;  %v1894_v35 = vadd.f32 %v1080_v28, %v1054_v29  ;;  %v1092_v52 = vadd.f32 %v1084_v15, %v1055_v24 }
 0x2ed   :  { %v1896_v38 = vadd.f32 %v1072_v46, %v1056_v39  ;;  %v1094_v22 = vadd.f32 %v1076_v1, %v1057_v45  ;;  %v1898_v25 = vadd.f32 %v1080_v28, %v1058_v34  ;;  %v1096_v50 = vadd.f32 %v1084_v15, %v1059_v43 }
 0x2ee   :  { %v1900_v26 = vadd.f32 %v1072_v46, %v1060_v36  ;;  %v1902_v0 = vadd.f32 %v1076_v1, %v1061_v58  ;;  %v1904_v2 = vadd.f32 %v1080_v28, %v1062_v48  ;;  %v1906_v4 = vadd.f32 %v1084_v15, %v1063_v20 }
 0x2ef   :  { %v1908_v5 = vadd.f32 %v1072_v46, %v1064_v11  ;;  %v1910_v27 = vadd.f32 %v1076_v1, %v1065_v7  ;;  %v1912_v32 = vadd.f32 %v1080_v28, %v1066_v12  ;;  %v1914_v33 = vadd.f32 %v1084_v15, %v1067_v9 }
 0x2f0   :  { %v1105_v63 = vmax.f32 %v1892_v57, 0.0  ;;  %v1106_v3 = vmax.f32 %v1090_v31, 0.0  ;;  %v1107_v37 = vmax.f32 %v1894_v35, 0.0  ;;  %v1108_v56 = vmax.f32 %v1092_v52, 0.0 }
 0x2f1   :  { %v1109_v62 = vmax.f32 %v1896_v38, 0.0  ;;  %v1110_v44 = vmax.f32 %v1094_v22, 0.0  ;;  %v1111_v53 = vmax.f32 %v1898_v25, 0.0  ;;  %v1112_v10 = vmax.f32 %v1096_v50, 0.0 }
 0x2f2   :  { %v1113_v19 = vmax.f32 %v1900_v26, 0.0  ;;  %v1114_v17 = vmax.f32 %v1902_v0, 0.0  ;;  %v1115_v16 = vmax.f32 %v1904_v2, 0.0  ;;  %v1116_v49 = vmax.f32 %v1906_v4, 0.0 }
 0x2f3   :  { %v1117_v8 = vmax.f32 %v1908_v5, 0.0  ;;  %v1118_v14 = vmax.f32 %v1910_v27, 0.0  ;;  %v1119_v18 = vmax.f32 %v1912_v32, 0.0  ;;  %v1120_v55 = vmax.f32 %v1914_v33, 0.0 }
 0x2f4   :  { %1491 = dma.done.wait [#allocation4 + $0x1], 4096 }
 0x2f5   :  { %1492 = vsyncadd [#allocation4 + $0x1], 4294963200  ;;  %v1125_v6 = vpack.c.bf16 %v1110_v44, %v1106_v3  ;;  %v1127_v47 = vpack.c.bf16 %v1112_v10, %v1108_v56  ;;  %v1140_v54 = vld [vmem:[#allocation3 + $0x40] sm:$0xff]  ;;  %v1141_v29 = vld [vmem:[#allocation3 + $0x48] sm:$0xff]  ;;  %v1124_v22 = vpack.c.bf16 %v1109_v62, %v1105_v63  ;;  %v1126_v50 = vpack.c.bf16 %v1111_v53, %v1107_v37 }
 0x2f6   :  { %v1156_v21 = vld [vmem:[#allocation3 + $0xc0] sm:$0xff]  ;;  %1314 = vmatprep.subr.bf16.mxu0 %v1140_v54  ;;  %v1157_v24 = vld [vmem:[#allocation3 + $0xc8] sm:$0xff]  ;;  %v1142_v39 = vld [vmem:[#allocation3 + $0x50] sm:$0xff]  ;;  %v1129_v3 = vpack.c.bf16 %v1118_v14, %v1114_v17  ;;  %v1131_v57 = vpack.c.bf16 %v1120_v55, %v1116_v49  ;;  %v1128_v35 = vpack.c.bf16 %v1117_v8, %v1113_v19  ;;  %v1130_v38 = vpack.c.bf16 %v1119_v18, %v1115_v16 }
 0x2f7   :  { %1197 = vmatprep.mubr.bf16.mxu0 %v1125_v6  ;;  %1246 = vmatprep.mubr.bf16.mxu1 %v1127_v47  ;;  %v1132_v42 = vld [vmem:[#allocation3] sm:$0xff]  ;;  %v1133_v30 = vld [vmem:[#allocation3 + $0x8] sm:$0xff]  ;;  %v1158_v45 = vld [vmem:[#allocation3 + $0xd0] sm:$0xff] }
 0x2f8   :  { %1342 = vmatprep.subr.bf16.mxu1 %v1156_v21  ;;  %v1148_v61 = vld [vmem:[#allocation3 + $0x80] sm:$0xff]  ;;  %1315 = vmatpush3.bf16.msra.mxu0 %v1132_v42  ;;  %v1149_v13 = vld [vmem:[#allocation3 + $0x88] sm:$0xff]  ;;  %v1134_v34 = vld [vmem:[#allocation3 + $0x10] sm:$0xff] }
 0x2f9   :  { %1343 = vmatpush3.bf16.msra.mxu1 %v1148_v61  ;;  %1316 = vmatprep.subr.bf16.mxu0 %v1141_v29  ;;  %v1150_v43 = vld [vmem:[#allocation3 + $0x90] sm:$0xff]  ;;  %v1143_v36 = vld [vmem:[#allocation3 + $0x58] sm:$0xff]  ;;  %v1144_v48 = vld [vmem:[#allocation3 + $0x60] sm:$0xff] }
 0x2fa   :  { %1344 = vmatprep.subr.bf16.mxu1 %v1157_v24  ;;  %v1159_v58 = vld [vmem:[#allocation3 + $0xd8] sm:$0xff]  ;;  %v1160_v20 = vld [vmem:[#allocation3 + $0xe0] sm:$0xff]  ;;  %v1145_v12 = vld [vmem:[#allocation3 + $0x68] sm:$0xff] }
 0x2fb   :  { %v1135_v60 = vld [vmem:[#allocation3 + $0x18] sm:$0xff]  ;;  %v1136_v11 = vld [vmem:[#allocation3 + $0x20] sm:$0xff]  ;;  %v1161_v9 = vld [vmem:[#allocation3 + $0xe8] sm:$0xff] }
 0x2fc   :  { %1317 = vmatpush3.bf16.msra.mxu0 %v1133_v30  ;;  %v1151_v41 = vld [vmem:[#allocation3 + $0x98] sm:$0xff]  ;;  %v1152_v7 = vld [vmem:[#allocation3 + $0xa0] sm:$0xff]  ;;  %v1137_v23 = vld [vmem:[#allocation3 + $0x28] sm:$0xff] }
 0x2fd   :  { %1345 = vmatpush3.bf16.msra.mxu1 %v1149_v13  ;;  %1318 = vmatprep.subr.bf16.mxu0 %v1142_v39  ;;  %v1153_v40 = vld [vmem:[#allocation3 + $0xa8] sm:$0xff]  ;;  %v1146_v59 = vld [vmem:[#allocation3 + $0x70] sm:$0xff]  ;;  %v1147_v28 = vld [vmem:[#allocation3 + $0x78] sm:$0xff] }
 0x2fe   :  { %1346 = vmatprep.subr.bf16.mxu1 %v1158_v45  ;;  %v1162_v51 = vld [vmem:[#allocation3 + $0xf0] sm:$0xff]  ;;  %v1163_v15 = vld [vmem:[#allocation3 + $0xf8] sm:$0xff]  ;;  %v1164_v4 = vld [vmem:[%s1971_s2 + $0x4] ss:$0 sm:$0xff]  ;;  %s1508_s2 = smov [#allocation8]  }
 0x2ff   :  { %v1138_v46 = vld [vmem:[#allocation3 + $0x30] sm:$0xff]  ;;  %v1139_v31 = vld [vmem:[#allocation3 + $0x38] sm:$0xff]  ;;  %s1272_s21 = sshll.u32 %s1508_s2, 4  ;;  %s1273_s21 = int_to_ptr.vmem [resolvable:$true] %s1272_s21 }
 0x300   :  { %1319 = vmatpush3.bf16.msra.mxu0 %v1134_v34  ;;  %v1154_v1 = vld [vmem:[#allocation3 + $0xb0] sm:$0xff]  ;;  %v1155_v52 = vld [vmem:[#allocation3 + $0xb8] sm:$0xff]  ;;  %s1465_s22 = scalar_lea.vmem %s1273_s21, 512  ;;  %p1470_p3 = scmp.lt.s32.totalorder %s1273_s21, %s1273_s21 }
 0x301   :  { %1347 = vmatpush3.bf16.msra.mxu1 %v1150_v43  ;;  %1320 = vmatprep.subr.bf16.mxu0 %v1143_v36  ;;  %p1466_p2 = scmp.ne.s32.totalorder %s1273_s21, %s1465_s22  ;;  %p1471_p4 = scmp.lt.s32.totalorder %s1465_s22, %s1465_s22 }
 0x302   :  { %1348 = vmatprep.subr.bf16.mxu1 %v1159_v58 }
 0x303   :  { %p1472_p5 = por %p1471_p4, %p1470_p3 }
 0x304   :  { %1321 = vmatpush3.bf16.msra.mxu0 %v1135_v60 }
 0x305   :  { %1349 = vmatpush3.bf16.msra.mxu1 %v1151_v41  ;;  %1322 = vmatprep.subr.bf16.mxu0 %v1144_v48  ;;  %p1473_p6 = pnand %p1472_p5, %p1466_p2 }
 0x306   :  { %1350 = vmatprep.subr.bf16.mxu1 %v1160_v20 }
 0x308   :  { %1323 = vmatpush3.bf16.msra.mxu0 %v1136_v11 }
 0x309   :  { %1351 = vmatpush3.bf16.msra.mxu1 %v1152_v7  ;;  %1324 = vmatprep.subr.bf16.mxu0 %v1145_v12 }
 0x30a   :  { %1352 = vmatprep.subr.bf16.mxu1 %v1161_v9 }
 0x30c   :  { %1325 = vmatpush3.bf16.msra.mxu0 %v1137_v23 }
 0x30d   :  { %1353 = vmatpush3.bf16.msra.mxu1 %v1153_v40  ;;  %1326 = vmatprep.subr.bf16.mxu0 %v1146_v59 }
 0x30e   :  { %1354 = vmatprep.subr.bf16.mxu1 %v1162_v51 }
 0x310   :  { %1327 = vmatpush3.bf16.msra.mxu0 %v1138_v46 }
 0x311   :  { %1355 = vmatpush3.bf16.msra.mxu1 %v1154_v1  ;;  %1328 = vmatprep.subr.bf16.mxu0 %v1147_v28 }
 0x312   :  { %1356 = vmatprep.subr.bf16.mxu1 %v1163_v15 }
 0x314   :  { %1329 = vmatpush3.bf16.msra.mxu0 %v1139_v31 }
 0x315   :  { %1357 = vmatpush3.bf16.msra.mxu1 %v1155_v52 }
 0x317   :  { %1198 = vmatmul.mubr.bf16.vlgmr.msra.gmra.mrb[16].mxu0 %v1124_v22 }
 0x318   :  { %1247 = vmatmul.mubr.bf16.vlgmr.msra.gmra.mrb[16].mxu1 %v1126_v50  ;;  %1205 = vmatprep.mubr.bf16.mxu0 %v1129_v3 }
 0x319   :  { %1254 = vmatprep.mubr.bf16.mxu1 %v1131_v57 }
 0x31f   :  { %1206 = vmatmul.mubr.bf16.gmra.mrb[20].mxu0 %v1128_v35 }
 0x320   :  { %1255 = vmatmul.mubr.bf16.gmra.mrb[20].mxu1 %v1130_v38 }
 0x3ea   :  { %v1330_v25 = vpop.f32.mrb[16].mxu0 }
 0x3eb   :  { %v1358_v0 = vpop.f32.mrb[16].mxu1  ;;  %v1331_v27 = vpop.f32.mrb[17].mxu0 }
 0x3ec   :  { %v1359_v33 = vpop.f32.mrb[17].mxu1  ;;  %v1332_v63 = vadd.f32 %v1331_v27, %v1330_v25  ;;  %v1333_v37 = vpop.f32.mrb[18].mxu0 }
 0x3ed   :  { %v1360_v26 = vadd.f32 %v1359_v33, %v1358_v0  ;;  %v1361_v5 = vpop.f32.mrb[18].mxu1  ;;  %v1334_v56 = vpop.f32.mrb[19].mxu0 }
 0x3ee   :  { %v1362_v62 = vpop.f32.mrb[19].mxu1  ;;  %v1200_v2 = vadd.f32 %v1332_v63, %v1164_v4  ;;  %v1335_v44 = vadd.f32 %v1334_v56, %v1333_v37 }
 0x3ef   :  { %v1363_v32 = vadd.f32 %v1362_v62, %v1361_v5 }
 0x3f0   :  { %v1249_v53 = vadd.f32 %v1360_v26, %v1200_v2  ;;  %v1203_v10 = vadd.f32 %v1335_v44, %v1164_v4 }
 0x3f2   :  { %1263 = vst [vmem:[#allocation8] sm:$0xff] %v1249_v53  ;;  %v1252_v19 = vadd.f32 %v1363_v32, %v1203_v10  ;;  %v1336_v17 = vpop.f32.mrb[20].mxu0 }
 0x3f3   :  { %v1364_v16 = vpop.f32.mrb[20].mxu1  ;;  %v1337_v49 = vpop.f32.mrb[21].mxu0 }
 0x3f4   :  { %v1365_v8 = vpop.f32.mrb[21].mxu1  ;;  %1264 = vst [vmem:[#allocation8 + $0x8] sm:$0xff] %v1252_v19  ;;  %v1338_v14 = vadd.f32 %v1337_v49, %v1336_v17  ;;  %v1339_v55 = vpop.f32.mrb[22].mxu0 }
 0x3f5   :  { %v1366_v18 = vadd.f32 %v1365_v8, %v1364_v16  ;;  %v1367_v6 = vpop.f32.mrb[22].mxu1  ;;  %v1340_v47 = vpop.f32.mrb[23].mxu0 }
 0x3f6   :  { %v1368_v54 = vpop.f32.mrb[23].mxu1  ;;  %v1208_v21 = vadd.f32 %v1338_v14, %v1164_v4  ;;  %v1341_v42 = vadd.f32 %v1340_v47, %v1339_v55 }
 0x3f7   :  { %v1369_v61 = vadd.f32 %v1368_v54, %v1367_v6 }
 0x3f8   :  { %v1257_v29 = vadd.f32 %v1366_v18, %v1208_v21  ;;  %v1211_v24 = vadd.f32 %v1341_v42, %v1164_v4 }
 0x3fa   :  { %1265 = vst [vmem:[#allocation8 + $0x10] sm:$0xff] %v1257_v29  ;;  %v1260_v30 = vadd.f32 %v1369_v61, %v1211_v24 }
 0x3fc   :  { %1266 = vst [vmem:[#allocation8 + $0x18] sm:$0xff] %v1260_v30 }
 0x3fd   :  { %1476 = shalt.err (!%p1473_p6)
}
 0x3fe   :  { %s1477_s24 = scalar_lea.hbm %s1974_s5, 512 }
 0x3ff   :  { %p1478_p7 = scmp.ne.s32.totalorder %s1974_s5, %s1477_s24  ;;  %p1481_p8 = scmp.lt.u32.totalorder %s1477_s24, %s1974_s5 }
 0x401   :  { %p1483_p9 = pnand %p1481_p8, %p1478_p7 }
 0x403   :  { %1486 = shalt.err (!%p1483_p9)
}
 0x404   :  { %s1509_s29 = smov 8  }
 0x405   :  { %1278 = dma.vmem_to_hbm [thread:$0]  %s1273_s21, 512, %s1974_s5, [#allocation7], %s1500_s9, %s1500_s9, %s1509_s29  }
 0x406   :  { %1493 = dma.done.wait [#allocation7], 512  }
 0x407   :  { %1494 = vsyncadd [#allocation7], 4294966784 }
 0x408   :  { %1282 = vsyncpa [#allocation6], 1 }
 0x409   :  { %1283 = vsyncpa [#allocation7], 1 }
 0x40a   :  { %1284 = vsyncmov [#allocation4] }
 0x40d   :  { %s1285_s7 = vpop.sfrf %1284 }
 0x40e   :  { %p1312_p10 = scmp.ne.s32.totalorder %s1285_s7, 0 }
 0x410   :  { %1289 = shalt.err (%p1312_p10)  }
 0x411   :  { %1291 = vsyncmov [#allocation4 + $0x1] }
 0x414   :  { %s1292_s8 = vpop.sfrf %1291 }
 0x415   :  { %p1313_p11 = scmp.ne.s32.totalorder %s1292_s8, 0 }
 0x417   :  { %1296 = shalt.err (%p1313_p11)  }

</bundles_post_ra>
